<compile_context>
chip_gen: v7x
topology: tpu7x:2x2x1
jax: 0.10.0
libtpu: 0.0.40
codegen_flags: <defaults>
</compile_context>

<pallas_src>
import functools

import jax
import jax.numpy as jnp
from jax import lax
from jax.experimental import pallas as pl
from jax.experimental.pallas import tpu as pltpu


_LANE = 128


def _round_up(x, m):
    return ((x + m - 1) // m) * m


def _vmem_plan(n_pad, d_pad, feat_itemsize, row_tile=None):
    """Pick the anchor tile and an explicit vmem_limit_bytes from real accounting."""
    try:
        vmem = int(pltpu.get_tpu_info().vmem_capacity_bytes)
    except Exception:
        vmem = 64 * 1024 * 1024  # v7x per-TC floor; safe on every generation
    try:
        kind = jax.devices()[0].device_kind.lower()
    except Exception:
        kind = ""
    if ("v7" in kind) or ("tpu7" in kind):
        vmem = min(vmem, 64 * 1024 * 1024)  # budget per TensorCore on v7x
    budget = int(vmem * 0.70)               # headroom for compiler scratch etc.

    def need(t):
        # Conservative: assume the grid-constant blocks still get 2 buffers
        # (the Buffered(1) request is best-effort and has a runtime fallback).
        resident = 2 * n_pad * d_pad * feat_itemsize   # contrast feature slab
        cgid = 2 * n_pad * _LANE * 4                   # (n_pad,1) i32 lane-pads to 128
        anchor = 2 * d_pad * t * feat_itemsize         # anchor tile, double-buffered
        agid = 2 * 8 * t * 4                           # (1,t) i32 sublane-pads to 8
        outs = 2 * 2 * 8 * t * 4                       # two (1,t) f32 outputs
        interm = 5 * n_pad * t * 4                     # logits/shifted/exp + mask temps
        return resident + cgid + anchor + agid + outs + interm

    if row_tile is None:
        tile = _LANE
        for t in (2048, 1024, 512, 256, 128):
            if n_pad % t:
                continue
            if n_pad > _LANE and n_pad // t < 2:
                # Keep >= 2 anchor tiles so both v7x TensorCores get anchors.
                continue
            if need(t) <= budget:
                tile = t
                break
    else:
        tile = int(row_tile)
    limit = int(min(vmem, max(need(tile) + (16 << 20), 32 << 20)))
    return tile, limit


def _default_exp_dtype(matmul_dtype):
    """bf16 exp only when the MXU feed is already bf16 AND the EUP supports it."""
    if jnp.dtype(matmul_dtype) != jnp.dtype(jnp.bfloat16):
        return jnp.float32
    try:
        kind = jax.devices()[0].device_kind.lower()
    except Exception:
        return jnp.float32
    if ("v6" in kind) or ("v7" in kind) or ("tpu7" in kind):
        return jnp.bfloat16   # v6e/v7x EUP runs bf16 natively
    return jnp.float32        # v5e: no bf16 EUP/VPU


def _supcon_kernel(cfeat_ref, afeat_t_ref, cgid_ref, agid_ref,
                   psum_ref, ldenom_ref, *, subtract_max, exp_dtype):
    # cfeat_ref:   [N_pad, D_pad]  contrast features (same block every tile -> resident)
    # afeat_t_ref: [D_pad, T]      this tile's anchor features, pre-transposed, / T folded
    # cgid_ref:    [N_pad, 1]      group id per contrast row (-1 for padding)
    # agid_ref:    [1, T]          group id per anchor in this tile
    # psum_ref:    [1, T]          sum over positives of (max-shifted) logits
    # ldenom_ref:  [1, T]          log sum_{valid} exp(max-shifted logits)
    n_pad = cfeat_ref.shape[0]
    t = afeat_t_ref.shape[1]

    # Standard [M,K] x [K,N] MXU product; 1/temperature is folded into the anchor
    # operand, so this is <contrast, anchor> / T directly. Layout [contrast, anchor]
    # keeps every per-anchor reduction / output lane-dense (1, T).
    logits = lax.dot_general(
        cfeat_ref[...], afeat_t_ref[...],
        dimension_numbers=(((1,), (0,)), ((), ())),
        preferred_element_type=jnp.float32)                        # [N_pad, T] f32

    a_start = pl.program_id(0) * t
    c_ids = lax.broadcasted_iota(jnp.int32, (n_pad, t), 0)
    a_ids = lax.broadcasted_iota(jnp.int32, (n_pad, t), 1) + a_start
    # Valid contrast rows: not self-contrast and not zero-padding. Padding rows
    # carry gid = -1, so row validity is a cheap (N_pad, 1) compare broadcast
    # over lanes (no second full-size iota / compare).
    valid = jnp.logical_and(c_ids != a_ids, cgid_ref[...] >= 0)
    pos = jnp.logical_and(cgid_ref[...] == agid_ref[...], valid)

    if subtract_max:
        # Padded rows/columns contribute logit 0; including 0 in the max is
        # harmless because the shift cancels exactly in log_prob.
        shifted = logits - jnp.max(logits, axis=0, keepdims=True)
    else:
        # Caller asserted bounded logits (e.g. L2-normalized features): exp
        # cannot overflow in f32, so the max pass is skipped entirely.
        shifted = logits

    if jnp.dtype(exp_dtype) == jnp.dtype(jnp.float32):
        exp_in = shifted
    else:
        exp_in = shifted.astype(exp_dtype)
    exp_l = jnp.where(valid, jnp.exp(exp_in), 0.0)
    denom = jnp.sum(exp_l, axis=0, keepdims=True, dtype=jnp.float32)   # (1, T)
    ldenom_ref[...] = jnp.log(denom)
    # Sum over positives of the (shifted) logits; the exact division by the
    # positive count and the `- log_denom` happen in the wrapper.
    psum_ref[...] = jnp.sum(jnp.where(pos, shifted, 0.0), axis=0, keepdims=True)


def supcon_loss(features, labels=None, mask=None, *,
                temperature=0.2, contrast_mode='all', base_temperature=0.2,
                matmul_dtype=jnp.bfloat16, exp_dtype=None,
                assume_bounded_logits=False, row_tile=None):
    """JAX/Pallas equivalent of SupConLoss.forward (contrast_mode='all')."""
    if features.ndim < 3:
        raise ValueError('`features` needs to be [bsz, n_views, ...]')
    if features.ndim > 3:
        features = features.reshape(features.shape[0], features.shape[1], -1)
    B, V, D = features.shape

    if labels is not None and mask is not None:
        raise ValueError('Cannot define both `labels` and `mask`')
    if contrast_mode != 'all':
        # TODO(synk): contrast_mode='one' (anchor = view 0 only) not implemented;
        # the module default used by LightGCN is 'all'.
        raise ValueError('Only contrast_mode="all" is implemented')
    if mask is not None:
        # TODO(synk): an arbitrary (possibly asymmetric) [bsz, bsz] mask is not
        # expressible as the in-kernel group-id comparison; only the labels /
        # SimCLR(eye) paths are kernelized.
        raise NotImplementedError('explicit `mask` path is not implemented')

    if labels is None:
        gid_base = jnp.arange(B, dtype=jnp.int32)      # eye mask == sample id
        counts_b = jnp.ones((B,), jnp.float32)         # each sample matches itself only
    else:
        labels = jnp.asarray(labels).reshape(-1)
        if labels.shape[0] != B:
            raise ValueError('Num of labels does not match num of features')
        labels = labels.astype(jnp.int32)
        gid_base = labels - jnp.min(labels)            # keep ids >= 0 (padding uses -1)
        counts_b = jnp.sum((labels[:, None] == labels[None, :]).astype(jnp.float32),
                           axis=1)

    N = B * V
    # contrast_feature = cat(unbind(features, 1), 0): view-major stacking.
    contrast_feature = jnp.transpose(features, (1, 0, 2)).reshape(N, D).astype(jnp.float32)
    gids = jnp.tile(gid_base, V)                       # group id of row v*B + b
    # Exact per-anchor positive count (self excluded) — computed once here so the
    # kernel never counts / divides.
    pos_cnt = jnp.tile(counts_b * V - 1.0, V)

    n_pad = _round_up(N, _LANE)
    d_pad = _round_up(D, _LANE)
    inv_temp = 1.0 / float(temperature)

    feat_f32 = jnp.zeros((n_pad, d_pad), jnp.float32).at[:N, :D].set(contrast_feature)
    cfeat = feat_f32.astype(matmul_dtype)
    # Pre-transposed anchor operand with 1/T folded in (one-time O(N*D) work in XLA).
    afeat_t = (feat_f32 * inv_temp).T.astype(matmul_dtype)
    gid_pad = jnp.full((n_pad,), -1, jnp.int32).at[:N].set(gids)
    cgid = gid_pad.reshape(n_pad, 1)
    agid = gid_pad.reshape(1, n_pad)

    t, vmem_limit = _vmem_plan(n_pad, d_pad, jnp.dtype(matmul_dtype).itemsize, row_tile)
    if n_pad % t:
        raise ValueError('row_tile must divide the padded anchor count')
    # TODO(synk): if N grows so large that the [n_pad, d_pad] contrast slab itself
    # no longer fits VMEM, add a contrast grid axis with an online-softmax
    # accumulator (flash-attention pattern); not needed at LightGCN sizes.

    if exp_dtype is None:
        exp_dtype = _default_exp_dtype(matmul_dtype)

    def run(single_buffer_resident, edt):
        kernel = functools.partial(
            _supcon_kernel,
            subtract_max=not assume_bounded_logits,
            exp_dtype=edt)
        const_kw = {}
        if single_buffer_resident:
            # Grid-constant blocks (index_map == (0,0)) don't need double buffers.
            const_kw = dict(pipeline_mode=pl.Buffered(1))
        in_specs = [
            pl.BlockSpec((n_pad, d_pad), lambda i: (0, 0), **const_kw),  # contrast slab
            pl.BlockSpec((d_pad, t), lambda i: (0, i)),                  # anchor tile
            pl.BlockSpec((n_pad, 1), lambda i: (0, 0), **const_kw),      # contrast gids
            pl.BlockSpec((1, t), lambda i: (0, i)),                      # anchor gids
        ]
        out_specs = [pl.BlockSpec((1, t), lambda i: (0, i)),
                     pl.BlockSpec((1, t), lambda i: (0, i))]
        return pl.pallas_call(
            kernel,
            grid=(n_pad // t,),
            in_specs=in_specs,
            out_specs=out_specs,
            out_shape=(jax.ShapeDtypeStruct((1, n_pad), jnp.float32),
                       jax.ShapeDtypeStruct((1, n_pad), jnp.float32)),
            compiler_params=pltpu.CompilerParams(
                dimension_semantics=("parallel",),
                vmem_limit_bytes=vmem_limit),
        )(cfeat, afeat_t, cgid, agid)

    try:
        psum, ldenom = run(True, exp_dtype)
    except Exception:
        # Conservative fallback: default double buffering, f32 exp.
        psum, ldenom = run(False, jnp.float32)

    psum = psum[0, :N]
    ldenom = ldenom[0, :N]
    # log_prob summed over positives / count  ==  psum / count - log_denom.
    # Anchors with zero positives (only possible for V=1 / singleton classes,
    # where the PyTorch reference produces NaN) contribute 0 to the mean here.
    mlpp = jnp.where(pos_cnt > 0.0,
                     psum / jnp.maximum(pos_cnt, 1.0) - ldenom, 0.0)
    return -(float(temperature) / float(base_temperature)) * jnp.mean(mlpp)


def _supcon_loss_ref(features, labels=None,
                     temperature=0.2, base_temperature=0.2):
    """Pure-JAX f32 reference mirroring the PyTorch module (contrast_mode='all')."""
    B, V, D = features.shape
    if labels is None:
        base_mask = jnp.eye(B, dtype=jnp.float32)
    else:
        labels = labels.reshape(-1, 1)
        base_mask = (labels == labels.T).astype(jnp.float32)
    cf = jnp.transpose(features, (1, 0, 2)).reshape(V * B, D).astype(jnp.float32)
    N = B * V
    logits = jnp.matmul(cf, cf.T, precision=lax.Precision.HIGHEST) / temperature
    logits = logits - jnp.max(logits, axis=1, keepdims=True)
    lmask = 1.0 - jnp.eye(N, dtype=jnp.float32)
    pmask = jnp.tile(base_mask, (V, V)) * lmask
    exp_logits = jnp.exp(logits) * lmask
    log_prob = logits - jnp.log(jnp.sum(exp_logits, axis=1, keepdims=True))
    mlpp = jnp.sum(pmask * log_prob, axis=1) / jnp.sum(pmask, axis=1)
    return jnp.mean(-(temperature / base_temperature) * mlpp)


if __name__ == "__main__":
    key = jax.random.PRNGKey(0)
    k1, k2 = jax.random.split(key)

    B, V, D = 8, 2, 32
    # L2-normalized features, as typically fed to SupCon.
    features = jax.random.normal(k1, (B, V, D), dtype=jnp.float32)
    features = features / jnp.linalg.norm(features, axis=-1, keepdims=True)
    labels = jax.random.randint(k2, (B,), 0, 3)

    ref_unsup = _supcon_loss_ref(features)
    ref_sup = _supcon_loss_ref(features, labels=labels)

    # f32 MXU feed: tight-ish check against the full-precision reference.
    loss_unsup_f32 = jax.block_until_ready(
        supcon_loss(features, matmul_dtype=jnp.float32))
    loss_sup_f32 = jax.block_until_ready(
        supcon_loss(features, labels=labels, matmul_dtype=jnp.float32))
    assert jnp.allclose(loss_unsup_f32, ref_unsup, rtol=2e-2, atol=2e-2), (
        loss_unsup_f32, ref_unsup)
    assert jnp.allclose(loss_sup_f32, ref_sup, rtol=2e-2, atol=2e-2), (
        loss_sup_f32, ref_sup)

    # L2-normalized inputs -> the max-subtraction pass can be skipped safely.
    loss_sup_nomax = jax.block_until_ready(
        supcon_loss(features, labels=labels, matmul_dtype=jnp.float32,
                    assume_bounded_logits=True))
    assert jnp.allclose(loss_sup_nomax, ref_sup, rtol=2e-2, atol=2e-2), (
        loss_sup_nomax, ref_sup)

    # Default bf16 MXU feed (f32 accumulation, optional bf16 exp on v6e/v7x):
    # looser tolerance for bf16 rounding.
    loss_unsup = jax.block_until_ready(supcon_loss(features))
    loss_sup = jax.block_until_ready(supcon_loss(features, labels=labels))
    assert jnp.allclose(loss_unsup, ref_unsup, rtol=6e-2, atol=6e-2), (
        loss_unsup, ref_unsup)
    assert jnp.allclose(loss_sup, ref_sup, rtol=6e-2, atol=6e-2), (
        loss_sup, ref_sup)

    print("KERNEL_OK")
</pallas_src>

<mosaic_0001>
module attributes {stable_mosaic.version = 11 : i64} {
  func.func @_supcon_kernel(%arg0: i32, %arg1: memref<128x128xf32, #tpu.memory_space<vmem>>, %arg2: memref<128x128xf32, #tpu.memory_space<vmem>>, %arg3: memref<128x1xi32, #tpu.memory_space<vmem>>, %arg4: memref<1x128xi32, #tpu.memory_space<vmem>>, %arg5: memref<1x128xf32, #tpu.memory_space<vmem>>, %arg6: memref<1x128xf32, #tpu.memory_space<vmem>>) attributes {dimension_semantics = [#tpu.dimension_semantics<parallel>], iteration_bounds = array<i64: 1>, scalar_prefetch = 0 : i64, scratch_operands = 0 : i64, tpu.core_type = #tpu.core_type<tc>, window_params = [{pipeline_mode = #tpu.pipeline_mode<synchronous>, transform_indices = @transform_0, window_bounds = array<i64: 128, 128>}, {transform_indices = @transform_1, window_bounds = array<i64: 128, 128>}, {pipeline_mode = #tpu.pipeline_mode<synchronous>, transform_indices = @transform_2, window_bounds = array<i64: 128, 1>}, {transform_indices = @transform_3, window_bounds = array<i64: 1, 128>}, {transform_indices = @transform_4, window_bounds = array<i64: 1, 128>}, {transform_indices = @transform_5, window_bounds = array<i64: 1, 128>}]} {
    %c0 = arith.constant 0 : index
    %c0_0 = arith.constant 0 : index
    %0 = vector.load %arg1[%c0, %c0_0] : memref<128x128xf32, #tpu.memory_space<vmem>>, vector<128x128xf32>
    %c0_1 = arith.constant 0 : index
    %c0_2 = arith.constant 0 : index
    %1 = vector.load %arg2[%c0_1, %c0_2] : memref<128x128xf32, #tpu.memory_space<vmem>>, vector<128x128xf32>
    %cst = arith.constant dense<0.000000e+00> : vector<128x128xf32>
    %2 = tpu.matmul %0, %1, %cst {dimension_numbers = #tpu.dot_dimension_numbers<[1], [0], [0], [1], [0, 0, 1, 1], [], []>} : vector<128x128xf32>, vector<128x128xf32>, vector<128x128xf32> -> vector<128x128xf32>
    %c128_i32 = arith.constant 128 : i32
    %3 = arith.muli %arg0, %c128_i32 : i32
    %4 = tpu.iota {dimensions = array<i32: 0>} : vector<128x128xi32>
    %5 = tpu.iota {dimensions = array<i32: 1>} : vector<128x128xi32>
    %6 = vector.broadcast %3 : i32 to vector<128x128xi32>
    %7 = arith.addi %5, %6 : vector<128x128xi32>
    %8 = arith.cmpi ne, %4, %7 : vector<128x128xi32>
    %c0_3 = arith.constant 0 : index
    %c0_4 = arith.constant 0 : index
    %9 = vector.load %arg3[%c0_3, %c0_4] : memref<128x1xi32, #tpu.memory_space<vmem>>, vector<128x1xi32>
    %c0_i32 = arith.constant 0 : i32
    %10 = vector.broadcast %c0_i32 : i32 to vector<128x1xi32>
    %11 = arith.cmpi sge, %9, %10 : vector<128x1xi32>
    %12 = vector.broadcast %11 : vector<128x1xi1> to vector<128x128xi1>
    %13 = arith.andi %8, %12 : vector<128x128xi1>
    %c0_5 = arith.constant 0 : index
    %c0_6 = arith.constant 0 : index
    %14 = vector.load %arg3[%c0_5, %c0_6] : memref<128x1xi32, #tpu.memory_space<vmem>>, vector<128x1xi32>
    %c0_7 = arith.constant 0 : index
    %c0_8 = arith.constant 0 : index
    %15 = vector.load %arg4[%c0_7, %c0_8] : memref<1x128xi32, #tpu.memory_space<vmem>>, vector<1x128xi32>
    %16 = vector.broadcast %14 : vector<128x1xi32> to vector<128x128xi32>
    %17 = vector.broadcast %15 : vector<1x128xi32> to vector<128x128xi32>
    %18 = arith.cmpi eq, %16, %17 : vector<128x128xi32>
    %19 = arith.andi %18, %13 : vector<128x128xi1>
    %cst_9 = arith.constant dense<0xFF800000> : vector<128xf32>
    %20 = vector.multi_reduction <maximumf>, %2, %cst_9 [0] : vector<128x128xf32> to vector<128xf32>
    %21 = vector.shape_cast %20 : vector<128xf32> to vector<1x128xf32>
    %22 = vector.broadcast %21 : vector<1x128xf32> to vector<128x128xf32>
    %23 = arith.subf %2, %22 : vector<128x128xf32>
    %24 = math.exp %23 : vector<128x128xf32>
    %cst_10 = arith.constant 0.000000e+00 : f32
    %25 = vector.broadcast %cst_10 : f32 to vector<128x128xf32>
    %26 = arith.select %13, %24, %25 : vector<128x128xi1>, vector<128x128xf32>
    %cst_11 = arith.constant dense<0.000000e+00> : vector<128xf32>
    %27 = vector.multi_reduction <add>, %26, %cst_11 [0] : vector<128x128xf32> to vector<128xf32>
    %28 = vector.shape_cast %27 : vector<128xf32> to vector<1x128xf32>
    %29 = math.log %28 : vector<1x128xf32>
    %c0_12 = arith.constant 0 : index
    %c0_13 = arith.constant 0 : index
    %30 = vector.load %arg6[%c0_12, %c0_13] : memref<1x128xf32, #tpu.memory_space<vmem>>, vector<1x128xf32>
    tpu.vector_store %arg6[%c0_12, %c0_13], %29 {strides = array<i32>} : memref<1x128xf32, #tpu.memory_space<vmem>>, vector<1x128xf32>,
    %cst_14 = arith.constant 0.000000e+00 : f32
    %31 = vector.broadcast %cst_14 : f32 to vector<128x128xf32>
    %32 = arith.select %19, %23, %31 : vector<128x128xi1>, vector<128x128xf32>
    %cst_15 = arith.constant dense<0.000000e+00> : vector<128xf32>
    %33 = vector.multi_reduction <add>, %32, %cst_15 [0] : vector<128x128xf32> to vector<128xf32>
    %34 = vector.shape_cast %33 : vector<128xf32> to vector<1x128xf32>
    %c0_16 = arith.constant 0 : index
    %c0_17 = arith.constant 0 : index
    %35 = vector.load %arg5[%c0_16, %c0_17] : memref<1x128xf32, #tpu.memory_space<vmem>>, vector<1x128xf32>
    tpu.vector_store %arg5[%c0_16, %c0_17], %34 {strides = array<i32>} : memref<1x128xf32, #tpu.memory_space<vmem>>, vector<1x128xf32>,
    return
  }
  func.func @transform_0(%arg0: i32) -> (i32, i32) {
    %c0_i32 = arith.constant 0 : i32
    %c0_i32_0 = arith.constant 0 : i32
    %c0_i32_1 = arith.constant 0 : i32
    return %c0_i32, %c0_i32_0 : i32, i32
  }
  func.func @transform_1(%arg0: i32) -> (i32, i32) {
    %c0_i32 = arith.constant 0 : i32
    %c0_i32_0 = arith.constant 0 : i32
    return %c0_i32, %arg0 : i32, i32
  }
  func.func @transform_2(%arg0: i32) -> (i32, i32) {
    %c0_i32 = arith.constant 0 : i32
    %c0_i32_0 = arith.constant 0 : i32
    %c0_i32_1 = arith.constant 0 : i32
    return %c0_i32, %c0_i32_0 : i32, i32
  }
  func.func @transform_3(%arg0: i32) -> (i32, i32) {
    %c0_i32 = arith.constant 0 : i32
    %c0_i32_0 = arith.constant 0 : i32
    return %c0_i32, %arg0 : i32, i32
  }
  func.func @transform_4(%arg0: i32) -> (i32, i32) {
    %c0_i32 = arith.constant 0 : i32
    %c0_i32_0 = arith.constant 0 : i32
    return %c0_i32, %arg0 : i32, i32
  }
  func.func @transform_5(%arg0: i32) -> (i32, i32) {
    %c0_i32 = arith.constant 0 : i32
    %c0_i32_0 = arith.constant 0 : i32
    return %c0_i32, %arg0 : i32, i32
  }
}

module attributes {stable_mosaic.version = 11 : i64} {
  func.func @_supcon_kernel(%arg0: i32, %arg1: memref<128x128xf32, #tpu.memory_space<vmem>>, %arg2: memref<128x128xf32, #tpu.memory_space<vmem>>, %arg3: memref<128x1xi32, #tpu.memory_space<vmem>>, %arg4: memref<1x128xi32, #tpu.memory_space<vmem>>, %arg5: memref<1x128xf32, #tpu.memory_space<vmem>>, %arg6: memref<1x128xf32, #tpu.memory_space<vmem>>) attributes {dimension_semantics = [#tpu.dimension_semantics<parallel>], iteration_bounds = array<i64: 1>, scalar_prefetch = 0 : i64, scratch_operands = 0 : i64, tpu.core_type = #tpu.core_type<tc>, window_params = [{pipeline_mode = #tpu.pipeline_mode<synchronous>, transform_indices = @transform_0, window_bounds = array<i64: 128, 128>}, {transform_indices = @transform_1, window_bounds = array<i64: 128, 128>}, {pipeline_mode = #tpu.pipeline_mode<synchronous>, transform_indices = @transform_2, window_bounds = array<i64: 128, 1>}, {transform_indices = @transform_3, window_bounds = array<i64: 1, 128>}, {transform_indices = @transform_4, window_bounds = array<i64: 1, 128>}, {transform_indices = @transform_5, window_bounds = array<i64: 1, 128>}]} {
    %c0 = arith.constant 0 : index
    %c0_0 = arith.constant 0 : index
    %0 = vector.load %arg1[%c0, %c0_0] : memref<128x128xf32, #tpu.memory_space<vmem>>, vector<128x128xf32>
    %c0_1 = arith.constant 0 : index
    %c0_2 = arith.constant 0 : index
    %1 = vector.load %arg2[%c0_1, %c0_2] : memref<128x128xf32, #tpu.memory_space<vmem>>, vector<128x128xf32>
    %cst = arith.constant dense<0.000000e+00> : vector<128x128xf32>
    %2 = tpu.matmul %0, %1, %cst {dimension_numbers = #tpu.dot_dimension_numbers<[1], [0], [0], [1], [0, 0, 1, 1], [], []>} : vector<128x128xf32>, vector<128x128xf32>, vector<128x128xf32> -> vector<128x128xf32>
    %c128_i32 = arith.constant 128 : i32
    %3 = arith.muli %arg0, %c128_i32 : i32
    %4 = tpu.iota {dimensions = array<i32: 0>} : vector<128x128xi32>
    %5 = tpu.iota {dimensions = array<i32: 1>} : vector<128x128xi32>
    %6 = vector.broadcast %3 : i32 to vector<128x128xi32>
    %7 = arith.addi %5, %6 : vector<128x128xi32>
    %8 = arith.cmpi ne, %4, %7 : vector<128x128xi32>
    %c0_3 = arith.constant 0 : index
    %c0_4 = arith.constant 0 : index
    %9 = vector.load %arg3[%c0_3, %c0_4] : memref<128x1xi32, #tpu.memory_space<vmem>>, vector<128x1xi32>
    %c0_i32 = arith.constant 0 : i32
    %10 = vector.broadcast %c0_i32 : i32 to vector<128x1xi32>
    %11 = arith.cmpi sge, %9, %10 : vector<128x1xi32>
    %12 = vector.broadcast %11 : vector<128x1xi1> to vector<128x128xi1>
    %13 = arith.andi %8, %12 : vector<128x128xi1>
    %c0_5 = arith.constant 0 : index
    %c0_6 = arith.constant 0 : index
    %14 = vector.load %arg3[%c0_5, %c0_6] : memref<128x1xi32, #tpu.memory_space<vmem>>, vector<128x1xi32>
    %c0_7 = arith.constant 0 : index
    %c0_8 = arith.constant 0 : index
    %15 = vector.load %arg4[%c0_7, %c0_8] : memref<1x128xi32, #tpu.memory_space<vmem>>, vector<1x128xi32>
    %16 = vector.broadcast %14 : vector<128x1xi32> to vector<128x128xi32>
    %17 = vector.broadcast %15 : vector<1x128xi32> to vector<128x128xi32>
    %18 = arith.cmpi eq, %16, %17 : vector<128x128xi32>
    %19 = arith.andi %18, %13 : vector<128x128xi1>
    %cst_9 = arith.constant dense<0xFF800000> : vector<128xf32>
    %20 = vector.multi_reduction <maximumf>, %2, %cst_9 [0] : vector<128x128xf32> to vector<128xf32>
    %21 = vector.shape_cast %20 : vector<128xf32> to vector<1x128xf32>
    %22 = vector.broadcast %21 : vector<1x128xf32> to vector<128x128xf32>
    %23 = arith.subf %2, %22 : vector<128x128xf32>
    %24 = math.exp %23 : vector<128x128xf32>
    %cst_10 = arith.constant 0.000000e+00 : f32
    %25 = vector.broadcast %cst_10 : f32 to vector<128x128xf32>
    %26 = arith.select %13, %24, %25 : vector<128x128xi1>, vector<128x128xf32>
    %cst_11 = arith.constant dense<0.000000e+00> : vector<128xf32>
    %27 = vector.multi_reduction <add>, %26, %cst_11 [0] : vector<128x128xf32> to vector<128xf32>
    %28 = vector.shape_cast %27 : vector<128xf32> to vector<1x128xf32>
    %29 = math.log %28 : vector<1x128xf32>
    %c0_12 = arith.constant 0 : index
    %c0_13 = arith.constant 0 : index
    %30 = vector.load %arg6[%c0_12, %c0_13] : memref<1x128xf32, #tpu.memory_space<vmem>>, vector<1x128xf32>
    tpu.vector_store %arg6[%c0_12, %c0_13], %29 {strides = array<i32>} : memref<1x128xf32, #tpu.memory_space<vmem>>, vector<1x128xf32>,
    %cst_14 = arith.constant 0.000000e+00 : f32
    %31 = vector.broadcast %cst_14 : f32 to vector<128x128xf32>
    %32 = arith.select %19, %23, %31 : vector<128x128xi1>, vector<128x128xf32>
    %cst_15 = arith.constant dense<0.000000e+00> : vector<128xf32>
    %33 = vector.multi_reduction <add>, %32, %cst_15 [0] : vector<128x128xf32> to vector<128xf32>
    %34 = vector.shape_cast %33 : vector<128xf32> to vector<1x128xf32>
    %c0_16 = arith.constant 0 : index
    %c0_17 = arith.constant 0 : index
    %35 = vector.load %arg5[%c0_16, %c0_17] : memref<1x128xf32, #tpu.memory_space<vmem>>, vector<1x128xf32>
    tpu.vector_store %arg5[%c0_16, %c0_17], %34 {strides = array<i32>} : memref<1x128xf32, #tpu.memory_space<vmem>>, vector<1x128xf32>,
    return
  }
  func.func @transform_0(%arg0: i32) -> (i32, i32) {
    %c0_i32 = arith.constant 0 : i32
    %c0_i32_0 = arith.constant 0 : i32
    %c0_i32_1 = arith.constant 0 : i32
    return %c0_i32, %c0_i32_0 : i32, i32
  }
  func.func @transform_1(%arg0: i32) -> (i32, i32) {
    %c0_i32 = arith.constant 0 : i32
    %c0_i32_0 = arith.constant 0 : i32
    return %c0_i32, %arg0 : i32, i32
  }
  func.func @transform_2(%arg0: i32) -> (i32, i32) {
    %c0_i32 = arith.constant 0 : i32
    %c0_i32_0 = arith.constant 0 : i32
    %c0_i32_1 = arith.constant 0 : i32
    return %c0_i32, %c0_i32_0 : i32, i32
  }
  func.func @transform_3(%arg0: i32) -> (i32, i32) {
    %c0_i32 = arith.constant 0 : i32
    %c0_i32_0 = arith.constant 0 : i32
    return %c0_i32, %arg0 : i32, i32
  }
  func.func @transform_4(%arg0: i32) -> (i32, i32) {
    %c0_i32 = arith.constant 0 : i32
    %c0_i32_0 = arith.constant 0 : i32
    return %c0_i32, %arg0 : i32, i32
  }
  func.func @transform_5(%arg0: i32) -> (i32, i32) {
    %c0_i32 = arith.constant 0 : i32
    %c0_i32_0 = arith.constant 0 : i32
    return %c0_i32, %arg0 : i32, i32
  }
}

</mosaic_0001>

<bundles_post_ra>
// kernel: tpu_custom_call.1
= control target key start
LH: loop header
LB: loop body
LE: loop exit
PB: predicated region body
PF: predicated region fallthrough
CT: control target
= control target key end

     0   :  { %11 = vsyncpa [#allocation3], 0  ;;  %s1679_s0 = inlined_call_operand.vmem [shape: f32[128,128], index: 0, kind: input, shape index: {}]   ;;  %s1680_s1 = inlined_call_operand.hbm [shape: f32[128,128], index: 1, kind: input, shape index: {}]   ;;  %s1681_s2 = inlined_call_operand.vmem [shape: s32[128,1], index: 2, kind: input, shape index: {}]   ;;  %s1682_s3 = inlined_call_operand.vmem [shape: s32[1,128], index: 3, kind: input, shape index: {}]   ;;  %s1683_s4 = inlined_call_operand.hbm [shape: f32[1,128], index: 4, kind: output, shape index: {0}]   ;;  %s1684_s5 = inlined_call_operand.hbm [shape: f32[1,128], index: 5, kind: output, shape index: {1}]  }
   0x1   :  { %12 = vsyncpa [#allocation4], 0 }
   0x2   :  { %13 = vsyncpa [#allocation7], 0  ;;  %s890_s18 = smov [#allocation2]   ;;  %s818_s22 = scalar_lea.hbm %s1680_s1, 2048 }
   0x3   :  { %s21_s19 = sshll.u32 %s890_s18, 4  ;;  %p819_p0 = scmp.ne.s32.totalorder %s1680_s1, %s818_s22  ;;  %s22_s19 = int_to_ptr.vmem [resolvable:$true] %s21_s19 }
   0x4   :  { %p822_p1 = scmp.lt.u32.totalorder %s818_s22, %s1680_s1 }
   0x6   :  { %p824_p2 = pnand %p822_p1, %p819_p0 }
   0x8   :  { %827 = shalt.err (!%p824_p2)
}
   0x9   :  { %s828_s27 = scalar_lea.vmem %s22_s19, 2048  ;;  %p833_p4 = scmp.lt.s32.totalorder %s22_s19, %s22_s19 }
   0xa   :  { %p829_p3 = scmp.ne.s32.totalorder %s22_s19, %s828_s27  ;;  %p834_p5 = scmp.lt.s32.totalorder %s828_s27, %s828_s27 }
   0xc   :  { %p835_p6 = por %p834_p5, %p833_p4 }
   0xe   :  { %p836_p7 = pnand %p835_p6, %p829_p3 }
  0x10   :  { %839 = shalt.err (!%p836_p7)
}
  0x11   :  { %s891_s28 = smov 128   ;;  %s892_s29 = smov 8  }
  0x12   :  { %27 = dma.hbm_to_vmem [thread:$0]  %s1680_s1, 2048, %s22_s19, [#allocation3], %s891_s28, %s891_s28, %s892_s29  }
  0x13   :  { %884 = dma.done.wait [#allocation3], 2048  }
  0x14   :  { %885 = vsyncadd [#allocation3], 4294965248  ;;  %v893_v0 = vmov 0   ;;  %v51_v1 = vld [vmem:[#allocation2] sm:$0xff]  ;;  %v52_v2 = vld [vmem:[#allocation2 + $0x8] sm:$0xff] }
  0x15   :  { %782 = vset.pattern.permute.xlu0 %v893_v0  ;;  %783 = vset.pattern.permute.xlu1 %v893_v0  ;;  %v53_v3 = vld [vmem:[#allocation2 + $0x10] sm:$0xff]  ;;  %v728_v4 = vpack.c.bf16 %v52_v2, %v51_v1  ;;  %v54_v5 = vld [vmem:[#allocation2 + $0x18] sm:$0xff]  ;;  %v55_v7 = vld [vmem:[#allocation2 + $0x20] sm:$0xff] }
  0x16   :  { %v732_v6 = vpack.c.bf16 %v54_v5, %v53_v3  ;;  %v56_v8 = vld [vmem:[#allocation2 + $0x28] sm:$0xff]  ;;  %v35_v10 = vld [vmem:[%s1679_s0] sm:$0xff]  ;;  %v57_v11 = vld [vmem:[#allocation2 + $0x30] sm:$0xff] }
  0x17   :  { %729 = vmatprep.subr.bf16.mxu0 %v728_v4  ;;  %760 = vmatprep.subr.bf16.mxu1 %v728_v4  ;;  %v736_v9 = vpack.c.bf16 %v56_v8, %v55_v7  ;;  %v58_v12 = vld [vmem:[#allocation2 + $0x38] sm:$0xff]  ;;  %v43_v13 = vld [vmem:[%s1679_s0 + $0x40] sm:$0xff]  ;;  %v60_v16 = vld [vmem:[#allocation2 + $0x48] sm:$0xff] }
  0x18   :  { %731 = vmatpush3.bf16.msra.mxu0 %v728_v4  ;;  %768 = vmatpush3.bf16.msra.mxu1 %v728_v4  ;;  %v740_v14 = vpack.c.bf16 %v58_v12, %v57_v11  ;;  %v59_v15 = vld [vmem:[#allocation2 + $0x40] sm:$0xff]  ;;  %v955_v18 = vld [vmem:[%s1681_s2 + $0x10] sm:$0xff]  ;;  %v251_v19 = vld [vmem:[%s1681_s2 + $0x8] sm:$0xff] }
  0x19   :  { %733 = vmatprep.subr.bf16.mxu0 %v732_v6  ;;  %761 = vmatprep.subr.bf16.mxu1 %v732_v6  ;;  %v949_v17 = vld [vmem:[%s1681_s2] sm:$0xff]  ;;  %v963_v20 = vld [vmem:[%s1681_s2 + $0x18] sm:$0xff]  ;;  %vm268_vm1 = vcmp.ge.s32.totalorder %v955_v18, 0  ;;  %vm267_vm2 = vcmp.ge.s32.totalorder %v251_v19, 0  ;;  %v744_v22 = vpack.c.bf16 %v60_v16, %v59_v15  ;;  %v977_v25 = vld [vmem:[%s1681_s2 + $0x28] sm:$0xff] }
  0x1a   :  { %704 = vmatprep.mubr.f32.mxu0 %v35_v10  ;;  %716 = vmatprep.mubr.f32.mxu1 %v43_v13  ;;  %vm266_vm0 = vcmp.ge.s32.totalorder %v949_v17, 0  ;;  %vm269_vm3 = vcmp.ge.s32.totalorder %v963_v20, 0  ;;  %v284_v23 = vsel %vm268_vm1, 1, %v893_v0  ;;  %v972_v24 = vld [vmem:[%s1681_s2 + $0x20] sm:$0xff]  ;;  %v61_v26 = vld [vmem:[#allocation2 + $0x50] sm:$0xff]  ;;  %v62_v27 = vld [vmem:[#allocation2 + $0x58] sm:$0xff] }
  0x1b   :  { %v282_v21 = vsel %vm266_vm0, 1, %v893_v0  ;;  %305 = vperm.xlu1 %783, %v284_v23   ;;  %v283_v28 = vsel %vm267_vm2, 1, %v893_v0  ;;  %v285_v29 = vsel %vm269_vm3, 1, %v893_v0  ;;  %vm270_vm4 = vcmp.ge.s32.totalorder %v972_v24, 0  ;;  %v986_v31 = vld [vmem:[%s1681_s2 + $0x30] sm:$0xff]  ;;  %v991_v32 = vld [vmem:[%s1681_s2 + $0x38] sm:$0xff] }
  0x1c   :  { %735 = vmatpush3.bf16.msra.mxu0 %v732_v6  ;;  %769 = vmatpush3.bf16.msra.mxu1 %v732_v6  ;;  %vm271_vm5 = vcmp.ge.s32.totalorder %v977_v25, 0  ;;  %v748_v30 = vpack.c.bf16 %v62_v27, %v61_v26  ;;  %v63_v33 = vld [vmem:[#allocation2 + $0x60] sm:$0xff]  ;;  %v64_v34 = vld [vmem:[#allocation2 + $0x68] sm:$0xff]  ;;  %v286_v35 = vsel %vm270_vm4, 1, %v893_v0  ;;  %vm272_vm6 = vcmp.ge.s32.totalorder %v986_v31, 0  ;;  %v65_v38 = vld [vmem:[#allocation2 + $0x70] sm:$0xff] }
  0x1d   :  { %737 = vmatprep.subr.bf16.mxu0 %v736_v9  ;;  %762 = vmatprep.subr.bf16.mxu1 %v736_v9  ;;  %v287_v36 = vsel %vm271_vm5, 1, %v893_v0  ;;  %vm273_vm7 = vcmp.ge.s32.totalorder %v991_v32, 0  ;;  %v752_v37 = vpack.c.bf16 %v64_v34, %v63_v33  ;;  %v66_v39 = vld [vmem:[#allocation2 + $0x78] sm:$0xff]  ;;  %v288_v40 = vsel %vm272_vm6, 1, %v893_v0  ;;  %v1002_v43 = vld [vmem:[%s1681_s2 + $0x40] sm:$0xff]  ;;  %v1008_v44 = vld [vmem:[%s1681_s2 + $0x48] sm:$0xff] }
  0x1e   :  { %299 = vperm.xlu0 %782, %v282_v21   ;;  %v289_v41 = vsel %vm273_vm7, 1, %v893_v0  ;;  %v756_v42 = vpack.c.bf16 %v66_v39, %v65_v38  ;;  %vm274_vm8 = vcmp.ge.s32.totalorder %v1002_v43, 0  ;;  %v36_v46 = vld [vmem:[%s1679_s0 + $0x8] sm:$0xff]  ;;  %vm275_vm9 = vcmp.ge.s32.totalorder %v1008_v44, 0  ;;  %v37_v48 = vld [vmem:[%s1679_s0 + $0x10] sm:$0xff]  ;;  %v38_v52 = vld [vmem:[%s1679_s0 + $0x18] sm:$0xff] }
  0x1f   :  { %308 = vperm.xlu1 %783, %v285_v29   ;;  %v290_v45 = vsel %vm274_vm8, 1, %v893_v0  ;;  %v44_v47 = vld [vmem:[%s1679_s0 + $0x48] sm:$0xff]  ;;  %v45_v49 = vld [vmem:[%s1679_s0 + $0x50] sm:$0xff]  ;;  %v291_v51 = vsel %vm275_vm9, 1, %v893_v0  ;;  %v46_v53 = vld [vmem:[%s1679_s0 + $0x58] sm:$0xff] }
  0x20   :  { %739 = vmatpush3.bf16.msra.mxu0 %v736_v9  ;;  %770 = vmatpush3.bf16.msra.mxu1 %v736_v9  ;;  %v260_v50 = vld [vmem:[%s1681_s2 + $0x50] sm:$0xff]  ;;  %v39_v54 = vld [vmem:[%s1679_s0 + $0x20] sm:$0xff]  ;;  %v261_v56 = vld [vmem:[%s1681_s2 + $0x58] sm:$0xff] }
  0x21   :  { %741 = vmatprep.subr.bf16.mxu0 %v740_v14  ;;  %763 = vmatprep.subr.bf16.mxu1 %v740_v14  ;;  %vm276_vm10 = vcmp.ge.s32.totalorder %v260_v50, 0  ;;  %v47_v55 = vld [vmem:[%s1679_s0 + $0x60] sm:$0xff]  ;;  %v40_v58 = vld [vmem:[%s1679_s0 + $0x28] sm:$0xff]  ;;  %vm277_vm11 = vcmp.ge.s32.totalorder %v261_v56, 0  ;;  %v41_v60 = vld [vmem:[%s1679_s0 + $0x30] sm:$0xff] }
  0x22   :  { %302 = vperm.xlu0 %782, %v283_v28   ;;  %v292_v57 = vsel %vm276_vm10, 1, %v893_v0  ;;  %v48_v59 = vld [vmem:[%s1679_s0 + $0x68] sm:$0xff]  ;;  %v49_v61 = vld [vmem:[%s1679_s0 + $0x70] sm:$0xff]  ;;  %v262_v62 = vld [vmem:[%s1681_s2 + $0x60] sm:$0xff]  ;;  %v293_v63 = vsel %vm277_vm11, 1, %v893_v0 }
  0x23   :  { %314 = vperm.xlu1 %783, %v287_v36   ;;  %v42_v1 = vld [vmem:[%s1679_s0 + $0x38] sm:$0xff]  ;;  %vm278_vm12 = vcmp.ge.s32.totalorder %v262_v62, 0  ;;  %v263_v3 = vld [vmem:[%s1681_s2 + $0x68] sm:$0xff]  ;;  %v264_v5 = vld [vmem:[%s1681_s2 + $0x70] sm:$0xff] }
  0x24   :  { %743 = vmatpush3.bf16.msra.mxu0 %v740_v14  ;;  %771 = vmatpush3.bf16.msra.mxu1 %v740_v14  ;;  %v50_v2 = vld [vmem:[%s1679_s0 + $0x78] sm:$0xff]  ;;  %v294_v4 = vsel %vm278_vm12, 1, %v893_v0  ;;  %vm279_vm13 = vcmp.ge.s32.totalorder %v263_v3, 0  ;;  %vm280_vm14 = vcmp.ge.s32.totalorder %v264_v5, 0 }
  0x25   :  { %745 = vmatprep.subr.bf16.mxu0 %v744_v22  ;;  %764 = vmatprep.subr.bf16.mxu1 %v744_v22  ;;  %v295_v6 = vsel %vm279_vm13, 1, %v893_v0  ;;  %v265_v7 = vld [vmem:[%s1681_s2 + $0x78] sm:$0xff]  ;;  %v296_v8 = vsel %vm280_vm14, 1, %v893_v0 }
  0x26   :  { %311 = vperm.xlu0 %782, %v286_v35   ;;  %vm281_vm15 = vcmp.ge.s32.totalorder %v265_v7, 0 }
  0x27   :  { %320 = vperm.xlu1 %783, %v289_v41   ;;  %v297_v9 = vsel %vm281_vm15, 1, %v893_v0 }
  0x28   :  { %747 = vmatpush3.bf16.msra.mxu0 %v744_v22  ;;  %772 = vmatpush3.bf16.msra.mxu1 %v744_v22 }
  0x29   :  { %749 = vmatprep.subr.bf16.mxu0 %v748_v30  ;;  %765 = vmatprep.subr.bf16.mxu1 %v748_v30 }
  0x2a   :  { %317 = vperm.xlu0 %782, %v288_v40  }
  0x2b   :  { %383 = vperm.xlu1 %783, %v251_v19  }
  0x2c   :  { %751 = vmatpush3.bf16.msra.mxu0 %v748_v30  ;;  %773 = vmatpush3.bf16.msra.mxu1 %v748_v30 }
  0x2d   :  { %753 = vmatprep.subr.bf16.mxu0 %v752_v37  ;;  %766 = vmatprep.subr.bf16.mxu1 %v752_v37 }
  0x2e   :  { %380 = vperm.xlu0 %782, %v949_v17  }
  0x2f   :  { %386 = vperm.xlu1 %783, %v955_v18  }
  0x30   :  { %755 = vmatpush3.bf16.msra.mxu0 %v752_v37  ;;  %774 = vmatpush3.bf16.msra.mxu1 %v752_v37 }
  0x31   :  { %757 = vmatprep.subr.bf16.mxu0 %v756_v42  ;;  %767 = vmatprep.subr.bf16.mxu1 %v756_v42 }
  0x32   :  { %323 = vperm.xlu0 %782, %v290_v45  }
  0x33   :  { %389 = vperm.xlu1 %783, %v963_v20  }
  0x34   :  { %759 = vmatpush3.bf16.msra.mxu0 %v756_v42  ;;  %775 = vmatpush3.bf16.msra.mxu1 %v756_v42 }
  0x36   :  { %326 = vperm.xlu0 %782, %v291_v51  }
  0x37   :  { %705 = vmatmul.mubr.f32.vlgmr.msra.gmra.mrb[0].mxu0 %v36_v46  ;;  %717 = vmatmul.mubr.f32.vlgmr.msra.gmra.mrb[0].mxu1 %v44_v47 }
  0x38   :  { %707 = vmatprep.mubr.f32.mxu0 %v37_v48  ;;  %719 = vmatprep.mubr.f32.mxu1 %v45_v49 }
  0x39   :  { %392 = vperm.xlu1 %783, %v972_v24  }
  0x3a   :  { %329 = vperm.xlu0 %782, %v292_v57  }
  0x3b   :  { %708 = vmatmul.mubr.f32.gmra.mrb[2].mxu0 %v38_v52  ;;  %720 = vmatmul.mubr.f32.gmra.mrb[2].mxu1 %v46_v53 }
  0x3c   :  { %710 = vmatprep.mubr.f32.mxu0 %v39_v54  ;;  %722 = vmatprep.mubr.f32.mxu1 %v47_v55  ;;  %v213_v55 = vlaneseq }
  0x3d   :  { %395 = vperm.xlu1 %783, %v977_v25  }
  0x3e   :  { %332 = vperm.xlu0 %782, %v293_v63  }
  0x3f   :  { %711 = vmatmul.mubr.f32.gmra.mrb[4].mxu0 %v40_v58  ;;  %723 = vmatmul.mubr.f32.gmra.mrb[4].mxu1 %v48_v59 }
  0x40   :  { %713 = vmatprep.mubr.f32.mxu0 %v41_v60  ;;  %725 = vmatprep.mubr.f32.mxu1 %v49_v61  ;;  %v1157_v60 = vshrl.u32 %v213_v55, 7 }
  0x41   :  { %398 = vperm.xlu1 %783, %v986_v31  }
  0x42   :  { %335 = vperm.xlu0 %782, %v294_v4   ;;  %v1166_v4 = vadd.s32 24, %v1157_v60 }
  0x43   :  { %714 = vmatmul.mubr.f32.gmra.mrb[6].mxu0 %v42_v1  ;;  %726 = vmatmul.mubr.f32.gmra.mrb[6].mxu1 %v50_v2  ;;  %v1161_v1 = vand.u32 127, %v213_v55  ;;  %v216_v2 = vadd.s32 16, %v1157_v60  ;;  %v1298_v55 = vadd.s32 80, %v1157_v60 }
  0x45   :  { %401 = vperm.xlu1 %783, %v991_v32   ;;  %vm234_vm0 = vcmp.ne.s32.totalorder %v1157_v60, %v1161_v1  ;;  %vm236_vm1 = vcmp.ne.s32.totalorder %v216_v2, %v1161_v1  ;;  %vm237_vm3 = vcmp.ne.s32.totalorder %v1166_v4, %v1161_v1 }
  0x46   :  { %338 = vperm.xlu0 %782, %v295_v6  }
  0x49   :  { %404 = vperm.xlu1 %783, %v1002_v43  }
  0x4a   :  { %341 = vperm.xlu0 %782, %v296_v8  }
  0x4d   :  { %407 = vperm.xlu1 %783, %v1008_v44  }
  0x4e   :  { %344 = vperm.xlu0 %782, %v297_v9   ;;  %v1180_v9 = vadd.s32 32, %v1157_v60 }
  0x50   :  { %vm238_vm11 = vcmp.ne.s32.totalorder %v1180_v9, %v1161_v1 }
  0x51   :  { %413 = vperm.xlu1 %783, %v261_v56  }
  0x52   :  { %410 = vperm.xlu0 %782, %v260_v50  }
  0x55   :  { %419 = vperm.xlu1 %783, %v263_v3   ;;  %v215_v3 = vadd.s32 8, %v1157_v60 }
  0x56   :  { %416 = vperm.xlu0 %782, %v262_v62  }
  0x57   :  { %vm235_vm2 = vcmp.ne.s32.totalorder %v215_v3, %v1161_v1  ;;  %v1337_v3 = vadd.s32 96, %v1157_v60 }
  0x59   :  { %425 = vperm.xlu1 %783, %v265_v7   ;;  %v1173_v7 = vld [vmem:[%s1682_s3] ss:$0 sm:$0xff]  ;;  %s894_s3 = smov [#allocation5]  }
  0x5a   :  { %422 = vperm.xlu0 %782, %v264_v5   ;;  %s616_s18 = sshll.u32 %s894_s3, 4  ;;  %s617_s18 = int_to_ptr.vmem [resolvable:$true] %s616_s18 }
  0x5b   :  { %s840_s19 = scalar_lea.vmem %s617_s18, 16  ;;  %s844_s20 = scalar_lea.vmem %s617_s18, 32 }
  0x5c   :  { %p841_p8 = scmp.ne.s32.totalorder %s617_s18, %s840_s19  ;;  %p845_p9 = scmp.lt.s32.totalorder %s617_s18, %s617_s18 }
  0x5d   :  { %p846_p10 = scmp.lt.s32.totalorder %s844_s20, %s840_s19 }
  0x5f   :  { %p847_p11 = por %p846_p10, %p845_p9 }
  0x61   :  { %p848_p12 = pnand %p847_p11, %p841_p8 }
  0x9a   :  { %v1090_v11 = vpop.permute.xlu1 %305 }
  0x9b   :  { %vm348_vm10 = vcmp.eq.s32.totalorder %v1090_v11, 1  ;;  %v1321_v11 = vadd.s32 88, %v1157_v60 }
  0x9d   :  { %v1088_v10 = vpop.permute.xlu0 %299 }
  0x9e   :  { %v1094_v13 = vpop.permute.xlu1 %308  ;;  %vm346_vm4 = vcmp.eq.s32.totalorder %v1088_v10, 1 }
  0x9f   :  { %vm1230_vm7 = vmand %vm234_vm0, %vm346_vm4  ;;  %vm349_vm15 = vcmp.eq.s32.totalorder %v1094_v13, 1 }
  0xa0   :  { %vm1307_vm4 = vmand %vm236_vm1, %vm348_vm10 }
  0xa1   :  { %v1092_v12 = vpop.permute.xlu0 %302  ;;  %vm1329_vm1 = vmand %vm237_vm3, %vm349_vm15 }
  0xa2   :  { %v1098_v0 = vpop.permute.xlu1 %314  ;;  %vm347_vm5 = vcmp.eq.s32.totalorder %v1092_v12, 1  ;;  %v1264_v12 = vadd.s32 64, %v1157_v60 }
  0xa3   :  { %vm1251_vm9 = vmand %vm235_vm2, %vm347_vm5  ;;  %vm351_vm10 = vcmp.eq.s32.totalorder %v1098_v0, 1 }
  0xa5   :  { %v1096_v14 = vpop.permute.xlu0 %311 }
  0xa6   :  { %v1102_v16 = vpop.permute.xlu1 %320 }
  0xa9   :  { %v1100_v15 = vpop.permute.xlu0 %317 }
  0xaa   :  { %v1106_v18 = vpop.permute.xlu1 %383 }
  0xab   :  { %vm432_vm8 = vcmp.eq.s32.totalorder %v1106_v18, %v1173_v7 }
  0xac   :  { %vm1293_vm2 = vmand %vm432_vm8, %vm1251_vm9 }
  0xad   :  { %v1104_v17 = vpop.permute.xlu0 %380 }
  0xae   :  { %v1118_v24 = vpop.permute.xlu1 %386  ;;  %vm431_vm6 = vcmp.eq.s32.totalorder %v1104_v17, %v1173_v7  ;;  %v1435_v17 = vadd.s32 120, %v1157_v60 }
  0xaf   :  { %vm1278_vm14 = vmand %vm431_vm6, %vm1230_vm7  ;;  %vm433_vm5 = vcmp.eq.s32.totalorder %v1118_v24, %v1173_v7  ;;  %vm350_vm6 = vcmp.eq.s32.totalorder %v1096_v14, 1 }
  0xb0   :  { %vm1362_vm15 = vmand %vm238_vm11, %vm350_vm6  ;;  %vm352_vm11 = vcmp.eq.s32.totalorder %v1100_v15, 1 }
  0xb1   :  { %v1116_v23 = vpop.permute.xlu0 %323 }
  0xb2   :  { %v1137_v36 = vpop.permute.xlu1 %389 }
  0xb5   :  { %v1134_v34 = vpop.permute.xlu0 %326 }
  0xb8   :  { %v1151_v52 = vpop.permute.xlu1 %392 }
  0xb9   :  { %v1147_v48 = vpop.permute.xlu0 %329 }
  0xbc   :  { %v1155_v58 = vpop.permute.xlu1 %395 }
  0xbd   :  { %v1153_v56 = vpop.permute.xlu0 %332  ;;  %vm436_vm3 = vcmp.eq.s32.totalorder %v1155_v58, %v1173_v7 }
  0xc0   :  { %v1168_v5 = vpop.permute.xlu1 %398 }
  0xc1   :  { %v1159_v62 = vpop.permute.xlu0 %335 }
 0x10a   :  { %v1108_v19 = vpop.f32.mrb[0].mxu0  ;;  %v1110_v20 = vpop.f32.mrb[0].mxu1 }
 0x10b   :  { %v1112_v21 = vpop.f32.mrb[1].mxu0  ;;  %v1114_v22 = vpop.f32.mrb[1].mxu1 }
 0x10e   :  { %v1120_v25 = vpop.f32.mrb[2].mxu0  ;;  %v1122_v26 = vpop.f32.mrb[2].mxu1 }
 0x10f   :  { %v143_v27 = vpop.f32.mrb[3].mxu0  ;;  %v1124_v28 = vpop.f32.mrb[3].mxu1 }
 0x112   :  { %v1126_v29 = vpop.f32.mrb[4].mxu0  ;;  %v1128_v30 = vpop.f32.mrb[4].mxu1 }
 0x113   :  { %v464_v31 = vmax.f32 %v1108_v19, %v1126_v29  ;;  %v153_v32 = vpop.f32.mrb[5].mxu0  ;;  %v1132_v33 = vpop.f32.mrb[5].mxu1 }
 0x114   :  { %v463_v35 = vmax.f32 %v1112_v21, %v153_v32 }
 0x115   :  { %v468_v37 = vmax.f32 %v464_v31, %v1110_v20  ;;  %v1185_v31 = vadd.s32 40, %v1157_v60 }
 0x116   :  { %v715_v38 = vpop.f32.mrb[6].mxu0  ;;  %v467_v39 = vmax.f32 %v463_v35, %v1114_v22  ;;  %v1141_v40 = vpop.f32.mrb[6].mxu1  ;;  %v1188_v35 = vadd.s32 48, %v1157_v60 }
 0x117   :  { %v472_v41 = vmax.f32 %v468_v37, %v1128_v30  ;;  %v466_v42 = vmax.f32 %v1120_v25, %v715_v38  ;;  %v163_v43 = vpop.f32.mrb[7].mxu0  ;;  %v203_v44 = vpop.f32.mrb[7].mxu1  ;;  %vm239_vm12 = vcmp.ne.s32.totalorder %v1185_v31, %v1161_v1 }
 0x118   :  { %v471_v45 = vmax.f32 %v467_v39, %v1132_v33  ;;  %v465_v46 = vmax.f32 %v143_v27, %v163_v43  ;;  %v1190_v37 = vpop.permute.xlu0 %338  ;;  %vm240_vm13 = vcmp.ne.s32.totalorder %v1188_v35, %v1161_v1 }
 0x119   :  { %v470_v47 = vmax.f32 %v466_v42, %v1122_v26  ;;  %v1201_v42 = vpop.permute.xlu1 %401 }
 0x11a   :  { %v475_v49 = vmax.f32 %v471_v45, %v472_v41  ;;  %v469_v50 = vmax.f32 %v465_v46, %v1124_v28  ;;  %v1197_v41 = vadd.s32 56, %v1157_v60 }
 0x11b   :  { %v474_v51 = vmax.f32 %v470_v47, %v1141_v40 }
 0x11c   :  { %v473_v53 = vmax.f32 %v469_v50, %v203_v44  ;;  %vm241_vm0 = vcmp.ne.s32.totalorder %v1197_v41, %v1161_v1 }
 0x11e   :  { %v476_v54 = vmax.f32 %v473_v53, %v474_v51 }
 0x120   :  { %v477_v57 = vmax.f32 %v475_v49, %v476_v54  ;;  %v1283_v54 = vadd.s32 72, %v1157_v60 }
 0x122   :  { %v478_v59 = vrot.slane %v477_v57, 4 }
 0x124   :  { %v479_v61 = vmax.f32 %v477_v57, %v478_v59  ;;  %v1300_v57 = vpop.permute.xlu1 %404 }
 0x126   :  { %v480_v63 = vrot.slane %v479_v61, 2 }
 0x128   :  { %v481_v6 = vmax.f32 %v479_v61, %v480_v63  ;;  %v1387_v9 = vpop.permute.xlu1 %407 }
 0x12a   :  { %v482_v8 = vrot.slane %v481_v6, 1 }
 0x12c   :  { %v1192_v39 = vmax.f32 %v481_v6, %v482_v8  ;;  %v1340_v6 = vadd.s32 104, %v1157_v60 }
 0x12e   :  { %v1204_v45 = vsub.f32 %v203_v44, %v1192_v39  ;;  %v484_v46 = vsub.f32 %v1112_v21, %v1192_v39  ;;  %v485_v47 = vsub.f32 %v1108_v19, %v1192_v39  ;;  %v1211_v10 = vsub.f32 %v143_v27, %v1192_v39 }
 0x12f   :  { %v1215_v49 = vsub.f32 %v1120_v25, %v1192_v39  ;;  %v1218_v50 = vsub.f32 %v153_v32, %v1192_v39  ;;  %v1222_v44 = vsub.f32 %v1126_v29, %v1192_v39  ;;  %v1225_v51 = vsub.f32 %v163_v43, %v1192_v39 }
 0x130   :  { %v1237_v21 = vsub.f32 %v715_v38, %v1192_v39  ;;  %v1241_v25 = vsub.f32 %v1114_v22, %v1192_v39  ;;  %v1245_v27 = vsub.f32 %v1110_v20, %v1192_v39  ;;  %v1257_v32 = vsub.f32 %v1124_v28, %v1192_v39  ;;  %v1266_v20 = vpop.permute.xlu0 %341 }
 0x131   :  { %v500_v38 = vmul.f32 1.442695, %v484_v46  ;;  %v502_v43 = vmul.f32 1.442695, %v485_v47  ;;  %v504_v22 = vmul.f32 1.442695, %v1211_v10  ;;  %v1377_v14 = vsub.f32 %v1128_v30, %v1192_v39 }
 0x132   :  { %v506_v53 = vmul.f32 1.442695, %v1215_v49  ;;  %v508_v59 = vmul.f32 1.442695, %v1218_v50  ;;  %v572_v18 = vsel %vm1278_vm14, %v484_v46, 0.0  ;;  %v573_v63 = vsel %vm1293_vm2, %v485_v47, 0.0  ;;  %vm1344_vm2 = vmand %vm433_vm5, %vm1307_vm4 }
 0x133   :  { %784 = vpow2.f32 %v500_v38  ;;  %v510_v2 = vmul.f32 1.442695, %v1222_v44  ;;  %vm434_vm14 = vcmp.eq.s32.totalorder %v1137_v36, %v1173_v7  ;;  %v512_v8 = vmul.f32 1.442695, %v1225_v51 }
 0x134   :  { %786 = vpow2.f32 %v502_v43  ;;  %v1350_v4 = vpop.permute.xlu0 %344  ;;  %v588_v46 = vadd.f32 %v573_v63, %v572_v18  ;;  %v1355_v47 = vsub.f32 %v1122_v26, %v1192_v39  ;;  %vm435_vm5 = vcmp.eq.s32.totalorder %v1151_v52, %v1173_v7  ;;  %vm450_vm6 = vmand %vm434_vm14, %vm1329_vm1 }
 0x135   :  { %788 = vpow2.f32 %v504_v22  ;;  %v574_v43 = vsel %vm1344_vm2, %v1211_v10, 0.0  ;;  %v1373_v26 = vsub.f32 %v1132_v33, %v1192_v39  ;;  %v514_v33 = vmul.f32 1.442695, %v1237_v21  ;;  %vm1395_vm2 = vmand %vm239_vm12, %vm351_vm10 }
 0x136   :  { %790 = vpow2.f32 %v506_v53  ;;  %v589_v10 = vadd.f32 %v588_v46, %v574_v43  ;;  %vm353_vm14 = vcmp.eq.s32.totalorder %v1102_v16, 1  ;;  %v1403_v36 = vadd.s32 112, %v1157_v60  ;;  %vm1411_vm8 = vmand %vm435_vm5, %vm1362_vm15 }
 0x137   :  { %792 = vpow2.f32 %v508_v59  ;;  %v575_v22 = vsel %vm450_vm6, %v1215_v49, 0.0  ;;  %vm245_vm12 = vcmp.ne.s32.totalorder %v1321_v11, %v1161_v1  ;;  %v516_v31 = vmul.f32 1.442695, %v1241_v25  ;;  %vm1427_vm10 = vmand %vm240_vm13, %vm352_vm11 }
 0x138   :  { %794 = vpow2.f32 %v510_v2  ;;  %v590_v53 = vadd.f32 %v589_v10, %v575_v22  ;;  %v1420_v28 = vsub.f32 %v1141_v40, %v1192_v39  ;;  %vm354_vm5 = vcmp.eq.s32.totalorder %v1116_v23, 1  ;;  %vm1445_vm13 = vmand %vm436_vm3, %vm1395_vm2  ;;  %v411_v39 = vpop.permute.xlu0 %410 }
 0x139   :  { %796 = vpow2.f32 %v512_v8  ;;  %vm437_vm6 = vcmp.eq.s32.totalorder %v1168_v5, %v1173_v7  ;;  %v576_v40 = vsel %vm1411_vm8, %v1218_v50, 0.0  ;;  %v518_v60 = vmul.f32 1.442695, %v1245_v27  ;;  %vm1459_vm8 = vmand %vm241_vm0, %vm353_vm14  ;;  %v414_v8 = vpop.permute.xlu1 %413 }
 0x13a   :  { %798 = vpow2.f32 %v514_v33  ;;  %v591_v59 = vadd.f32 %v590_v53, %v576_v40  ;;  %vm355_vm3 = vcmp.eq.s32.totalorder %v1134_v34, 1  ;;  %vm438_vm11 = vcmp.eq.s32.totalorder %v1201_v42, %v1173_v7 }
 0x13b   :  { %v577_v63 = vsel %vm1445_vm13, %v1222_v44, 0.0  ;;  %800 = vpow2.f32 %v516_v31  ;;  %v520_v29 = vmul.f32 1.442695, %v1257_v32  ;;  %vm439_vm13 = vcmp.eq.s32.totalorder %v1300_v57, %v1173_v7 }
 0x13c   :  { %v592_v13 = vadd.f32 %v591_v59, %v577_v63  ;;  %802 = vpow2.f32 %v518_v60  ;;  %v522_v61 = vmul.f32 1.442695, %v1355_v47  ;;  %vm357_vm0 = vcmp.eq.s32.totalorder %v1153_v56, 1  ;;  %v417_v22 = vpop.permute.xlu0 %416 }
 0x13d   :  { %v785_v49 = vpop.eup %784  ;;  %804 = vpow2.f32 %v520_v29  ;;  %v524_v0 = vmul.f32 1.442695, %v1373_v26  ;;  %v420_v53 = vpop.permute.xlu1 %419 }
 0x13e   :  { %v787_v15 = vpop.eup %786  ;;  %v532_v50 = vsel %vm1230_vm7, %v785_v49, 0.0  ;;  %vm1476_vm7 = vmand %vm437_vm6, %vm1427_vm10  ;;  %vm356_vm6 = vcmp.eq.s32.totalorder %v1147_v48, 1  ;;  %806 = vpow2.f32 %v522_v61  ;;  %v526_v49 = vmul.f32 1.442695, %v1377_v14 }
 0x13f   :  { %v789_v18 = vpop.eup %788  ;;  %v533_v19 = vsel %vm1251_vm9, %v787_v15, 0.0  ;;  %vm1713_vm9 = vcmp.ne.s32.totalorder %v1264_v12, %v1161_v1  ;;  %v578_v46 = vsel %vm1476_vm7, %v1225_v51, 0.0  ;;  %v528_v15 = vmul.f32 1.442695, %v1204_v45 }
 0x140   :  { %v791_v16 = vpop.eup %790  ;;  %v548_v2 = vadd.f32 %v533_v19, %v532_v50  ;;  %vm1488_vm14 = vmand %vm1713_vm9, %vm354_vm5  ;;  %v534_v44 = vsel %vm1307_vm4, %v789_v18, 0.0  ;;  %v593_v43 = vadd.f32 %v592_v13, %v578_v46  ;;  %vm1716_vm4 = vcmp.ne.s32.totalorder %v1283_v54, %v1161_v1 }
 0x141   :  { %v793_v23 = vpop.eup %792  ;;  %vm454_vm5 = vmand %vm438_vm11, %vm1459_vm8  ;;  %vm440_vm11 = vcmp.eq.s32.totalorder %v1387_v9, %v1173_v7  ;;  %v535_v42 = vsel %vm1329_vm1, %v791_v16, 0.0  ;;  %vm1719_vm1 = vcmp.ne.s32.totalorder %v1298_v55, %v1161_v1  ;;  %vm441_vm9 = vcmp.eq.s32.totalorder %v411_v39, %v1173_v7  ;;  %v426_v19 = vpop.permute.xlu1 %425 }
 0x142   :  { %v549_v12 = vadd.f32 %v548_v2, %v534_v44  ;;  %vm1513_vm7 = vmand %vm1716_vm4, %vm355_vm3  ;;  %v579_v33 = vsel %vm454_vm5, %v1237_v21, 0.0  ;;  %v795_v10 = vpop.eup %794  ;;  %vm358_vm5 = vcmp.eq.s32.totalorder %v1159_v62, 1  ;;  %v536_v57 = vsel %vm1362_vm15, %v793_v23, 0.0  ;;  %v423_v62 = vpop.permute.xlu0 %422 }
 0x143   :  { %vm455_vm3 = vmand %vm439_vm13, %vm1488_vm14  ;;  %v594_v54 = vadd.f32 %v593_v43, %v579_v33  ;;  %v797_v31 = vpop.eup %796  ;;  %v537_v38 = vsel %vm1395_vm2, %v795_v10, 0.0  ;;  %808 = vpow2.f32 %v524_v0  ;;  %vm1724_vm2 = vcmp.ne.s32.totalorder %v1337_v3, %v1161_v1 }
 0x144   :  { %v550_v34 = vadd.f32 %v549_v12, %v535_v42  ;;  %vm1534_vm4 = vmand %vm1719_vm1, %vm356_vm6  ;;  %v580_v24 = vsel %vm455_vm3, %v1241_v25, 0.0  ;;  %vm359_vm6 = vcmp.eq.s32.totalorder %v1190_v37, 1  ;;  %v799_v40 = vpop.eup %798  ;;  %vm360_vm3 = vcmp.eq.s32.totalorder %v1266_v20, 1 }
 0x145   :  { %vm456_vm13 = vmand %vm440_vm11, %vm1513_vm7  ;;  %v595_v55 = vadd.f32 %v594_v54, %v580_v24  ;;  %vm442_vm11 = vcmp.eq.s32.totalorder %v414_v8, %v1173_v7  ;;  %v538_v30 = vsel %vm1427_vm10, %v797_v31, 0.0  ;;  %v801_v39 = vpop.eup %800  ;;  %810 = vpow2.f32 %v526_v49 }
 0x146   :  { %v551_v48 = vadd.f32 %v550_v34, %v536_v57  ;;  %vm1554_vm15 = vmand %vm245_vm12, %vm357_vm0  ;;  %v581_v9 = vsel %vm456_vm13, %v1245_v27, 0.0  ;;  %v530_v3 = vmul.f32 1.442695, %v1420_v28  ;;  %vm1727_vm10 = vcmp.ne.s32.totalorder %v1340_v6, %v1161_v1  ;;  %v803_v18 = vpop.eup %802 }
 0x147   :  { %vm457_vm12 = vmand %vm441_vm9, %vm1534_vm4  ;;  %v596_v11 = vadd.f32 %v595_v55, %v581_v9  ;;  %vm443_vm9 = vcmp.eq.s32.totalorder %v417_v22, %v1173_v7  ;;  %vm249_vm13 = vcmp.ne.s32.totalorder %v1435_v17, %v1161_v1  ;;  %v539_v52 = vsel %vm1459_vm8, %v799_v40, 0.0  ;;  %v805_v16 = vpop.eup %804 }
 0x148   :  { %v552_v56 = vadd.f32 %v551_v48, %v537_v38  ;;  %vm1573_vm0 = vmand %vm1724_vm2, %vm358_vm5  ;;  %v582_v35 = vsel %vm457_vm12, %v1257_v32, 0.0  ;;  %vm361_vm12 = vcmp.eq.s32.totalorder %v1350_v4, 1  ;;  %812 = vpow2.f32 %v528_v15  ;;  %v807_v2 = vpop.eup %806 }
 0x149   :  { %v597_v50 = vadd.f32 %v596_v11, %v582_v35  ;;  %vm458_vm1 = vmand %vm442_vm11, %vm1554_vm15  ;;  %vm444_vm11 = vcmp.eq.s32.totalorder %v420_v53, %v1173_v7  ;;  %vm1730_vm8 = vcmp.ne.s32.totalorder %v1403_v36, %v1161_v1  ;;  %v540_v58 = vsel %vm1488_vm14, %v801_v39, 0.0 }
 0x14a   :  { %v553_v60 = vadd.f32 %v552_v56, %v538_v30  ;;  %vm1592_vm5 = vmand %vm1727_vm10, %vm359_vm6  ;;  %v583_v59 = vsel %vm458_vm1, %v1355_v47, 0.0  ;;  %vm445_vm1 = vcmp.eq.s32.totalorder %v423_v62, %v1173_v7  ;;  %814 = vpow2.f32 %v530_v3 }
 0x14b   :  { %v598_v6 = vadd.f32 %v597_v50, %v583_v59  ;;  %vm459_vm6 = vmand %vm443_vm9, %vm1573_vm0  ;;  %vm446_vm14 = vcmp.eq.s32.totalorder %v426_v19, %v1173_v7  ;;  %v542_v1 = vsel %vm1534_vm4, %v805_v16, 0.0  ;;  %v543_v7 = vsel %vm1554_vm15, %v807_v2, 0.0 }
 0x14c   :  { %v554_v37 = vadd.f32 %v553_v60, %v539_v52  ;;  %vm1612_vm2 = vmand %vm1730_vm8, %vm360_vm3  ;;  %v584_v63 = vsel %vm459_vm6, %v1373_v26, 0.0  ;;  %v541_v26 = vsel %vm1513_vm7, %v803_v18, 0.0 }
 0x14d   :  { %v599_v29 = vadd.f32 %v598_v6, %v584_v63  ;;  %vm460_vm9 = vmand %vm444_vm11, %vm1592_vm5  ;;  %v809_v17 = vpop.eup %808 }
 0x14e   :  { %v555_v41 = vadd.f32 %v554_v37, %v540_v58  ;;  %vm1629_vm3 = vmand %vm249_vm13, %vm361_vm12  ;;  %v585_v36 = vsel %vm460_vm9, %v1377_v14, 0.0  ;;  %v544_v43 = vsel %vm1573_vm0, %v809_v17, 0.0 }
 0x14f   :  { %v600_v8 = vadd.f32 %v599_v29, %v585_v36  ;;  %vm461_vm10 = vmand %vm445_vm1, %vm1612_vm2  ;;  %v811_v46 = vpop.eup %810 }
 0x150   :  { %v556_v13 = vadd.f32 %v555_v41, %v541_v26  ;;  %v586_v4 = vsel %vm461_vm10, %v1204_v45, 0.0  ;;  %vm462_vm7 = vmand %vm446_vm14, %vm1629_vm3  ;;  %v545_v42 = vsel %vm1592_vm5, %v811_v46, 0.0 }
 0x151   :  { %v601_v44 = vadd.f32 %v600_v8, %v586_v4  ;;  %v587_v14 = vsel %vm462_vm7, %v1420_v28, 0.0 }
 0x152   :  { %v557_v5 = vadd.f32 %v556_v13, %v542_v1  ;;  %v813_v61 = vpop.eup %812 }
 0x153   :  { %v602_v12 = vadd.f32 %v601_v44, %v587_v14  ;;  %v546_v54 = vsel %vm1612_vm2, %v813_v61, 0.0 }
 0x154   :  { %v558_v23 = vadd.f32 %v557_v5, %v543_v7  ;;  %v815_v33 = vpop.eup %814 }
 0x155   :  { %v603_v51 = vrot.slane %v602_v12, 4  ;;  %v547_v0 = vsel %vm1629_vm3, %v815_v33, 0.0 }
 0x156   :  { %v559_v45 = vadd.f32 %v558_v23, %v544_v43 }
 0x157   :  { %v604_v10 = vadd.f32 %v603_v51, %v602_v12 }
 0x158   :  { %v560_v34 = vadd.f32 %v559_v45, %v545_v42 }
 0x159   :  { %v605_v22 = vrot.slane %v604_v10, 2 }
 0x15a   :  { %v561_v28 = vadd.f32 %v560_v34, %v546_v54 }
 0x15b   :  { %v606_v21 = vadd.f32 %v605_v22, %v604_v10 }
 0x15c   :  { %v562_v57 = vadd.f32 %v561_v28, %v547_v0 }
 0x15d   :  { %v607_v24 = vrot.slane %v606_v21, 1 }
 0x15e   :  { %v563_v31 = vrot.slane %v562_v57, 4 }
 0x15f   :  { %v608_v48 = vadd.f32 %v607_v24, %v606_v21 }
 0x160   :  { %v564_v55 = vadd.f32 %v563_v31, %v562_v57 }
 0x161   :  { %609 = vst [vmem:[#allocation5] sm:$0x1] %v608_v48 }
 0x162   :  { %v565_v53 = vrot.slane %v564_v55, 2 }
 0x163   :  { %851 = shalt.err (!%p848_p12)
}
 0x164   :  { %s852_s23 = scalar_lea.hbm %s1683_s4, 16 }
 0x165   :  { %p853_p13 = scmp.ne.s32.totalorder %s1683_s4, %s852_s23  ;;  %p856_p0 = scmp.lt.u32.totalorder %s852_s23, %s1683_s4 }
 0x167   :  { %p858_p1 = pnand %p856_p0, %p853_p13 }
 0x169   :  { %861 = shalt.err (!%p858_p1)
}
 0x16a   :  { %619 = dma.vmem_to_hbm [thread:$0]  %s617_s18, 16, %s1683_s4, [#allocation4]   ;;  %v566_v49 = vadd.f32 %v565_v53, %v564_v55 }
 0x16b   :  { %s895_s30 = smov [#allocation6]  }
 0x16c   :  { %v567_v25 = vrot.slane %v566_v49, 1  ;;  %s626_s6 = sshll.u32 %s895_s30, 4  ;;  %s627_s6 = int_to_ptr.vmem [resolvable:$true] %s626_s6 }
 0x16d   :  { %s862_s1 = scalar_lea.vmem %s627_s6, 16  ;;  %s866_s7 = scalar_lea.vmem %s627_s6, 32 }
 0x16e   :  { %v568_v38 = vadd.f32 %v567_v25, %v566_v49  ;;  %p863_p2 = scmp.ne.s32.totalorder %s627_s6, %s862_s1  ;;  %p867_p3 = scmp.lt.s32.totalorder %s627_s6, %s627_s6 }
 0x16f   :  { %p868_p4 = scmp.lt.s32.totalorder %s866_s7, %s862_s1 }
 0x170   :  { %816 = vlog2.f32 %v568_v38 }
 0x171   :  { %p869_p5 = por %p868_p4, %p867_p3 }
 0x173   :  { %p870_p6 = pnand %p869_p5, %p863_p2 }
 0x17a   :  { %v817_v9 = vpop.eup %816 }
 0x17b   :  { %v570_v40 = vmul.f32 0.6931472, %v817_v9 }
 0x17d   :  { %571 = vst [vmem:[#allocation6] sm:$0x1] %v570_v40 }
 0x17e   :  { %873 = shalt.err (!%p870_p6)
}
 0x17f   :  { %s874_s9 = scalar_lea.hbm %s1684_s5, 16 }
 0x180   :  { %p875_p7 = scmp.ne.s32.totalorder %s1684_s5, %s874_s9  ;;  %p878_p8 = scmp.lt.u32.totalorder %s874_s9, %s1684_s5 }
 0x182   :  { %p880_p9 = pnand %p878_p8, %p875_p7 }
 0x184   :  { %883 = shalt.err (!%p880_p9)
}
 0x185   :  { %629 = dma.vmem_to_hbm [thread:$0]  %s627_s6, 16, %s1684_s5, [#allocation7]  }
 0x186   :  { %886 = dma.done.wait [#allocation4], 16  }
 0x187   :  { %887 = vsyncadd [#allocation4], 4294967280 }
 0x188   :  { %888 = dma.done.wait [#allocation7], 16  }
 0x189   :  { %889 = vsyncadd [#allocation7], 4294967280 }
 0x18a   :  { %636 = vsyncpa [#allocation3], 1 }
 0x18b   :  { %637 = vsyncpa [#allocation4], 1 }
 0x18c   :  { %638 = vsyncpa [#allocation7], 1 }

// kernel: tpu_custom_call.1
= control target key start
LH: loop header
LB: loop body
LE: loop exit
PB: predicated region body
PF: predicated region fallthrough
CT: control target
= control target key end

     0   :  { %11 = vsyncpa [#allocation3], 0  ;;  %s1679_s0 = inlined_call_operand.vmem [shape: f32[128,128], index: 0, kind: input, shape index: {}]   ;;  %s1680_s1 = inlined_call_operand.hbm [shape: f32[128,128], index: 1, kind: input, shape index: {}]   ;;  %s1681_s2 = inlined_call_operand.vmem [shape: s32[128,1], index: 2, kind: input, shape index: {}]   ;;  %s1682_s3 = inlined_call_operand.vmem [shape: s32[1,128], index: 3, kind: input, shape index: {}]   ;;  %s1683_s4 = inlined_call_operand.hbm [shape: f32[1,128], index: 4, kind: output, shape index: {0}]   ;;  %s1684_s5 = inlined_call_operand.hbm [shape: f32[1,128], index: 5, kind: output, shape index: {1}]  }
   0x1   :  { %12 = vsyncpa [#allocation4], 0 }
   0x2   :  { %13 = vsyncpa [#allocation7], 0  ;;  %s890_s18 = smov [#allocation2]   ;;  %s818_s22 = scalar_lea.hbm %s1680_s1, 2048 }
   0x3   :  { %s21_s19 = sshll.u32 %s890_s18, 4  ;;  %p819_p0 = scmp.ne.s32.totalorder %s1680_s1, %s818_s22  ;;  %s22_s19 = int_to_ptr.vmem [resolvable:$true] %s21_s19 }
   0x4   :  { %p822_p1 = scmp.lt.u32.totalorder %s818_s22, %s1680_s1 }
   0x6   :  { %p824_p2 = pnand %p822_p1, %p819_p0 }
   0x8   :  { %827 = shalt.err (!%p824_p2)
}
   0x9   :  { %s828_s27 = scalar_lea.vmem %s22_s19, 2048  ;;  %p833_p4 = scmp.lt.s32.totalorder %s22_s19, %s22_s19 }
   0xa   :  { %p829_p3 = scmp.ne.s32.totalorder %s22_s19, %s828_s27  ;;  %p834_p5 = scmp.lt.s32.totalorder %s828_s27, %s828_s27 }
   0xc   :  { %p835_p6 = por %p834_p5, %p833_p4 }
   0xe   :  { %p836_p7 = pnand %p835_p6, %p829_p3 }
  0x10   :  { %839 = shalt.err (!%p836_p7)
}
  0x11   :  { %s891_s28 = smov 128   ;;  %s892_s29 = smov 8  }
  0x12   :  { %27 = dma.hbm_to_vmem [thread:$0]  %s1680_s1, 2048, %s22_s19, [#allocation3], %s891_s28, %s891_s28, %s892_s29  }
  0x13   :  { %884 = dma.done.wait [#allocation3], 2048  }
  0x14   :  { %885 = vsyncadd [#allocation3], 4294965248  ;;  %v893_v0 = vmov 0   ;;  %v51_v1 = vld [vmem:[#allocation2] sm:$0xff]  ;;  %v52_v2 = vld [vmem:[#allocation2 + $0x8] sm:$0xff] }
  0x15   :  { %782 = vset.pattern.permute.xlu0 %v893_v0  ;;  %783 = vset.pattern.permute.xlu1 %v893_v0  ;;  %v53_v3 = vld [vmem:[#allocation2 + $0x10] sm:$0xff]  ;;  %v728_v4 = vpack.c.bf16 %v52_v2, %v51_v1  ;;  %v54_v5 = vld [vmem:[#allocation2 + $0x18] sm:$0xff]  ;;  %v55_v7 = vld [vmem:[#allocation2 + $0x20] sm:$0xff] }
  0x16   :  { %v732_v6 = vpack.c.bf16 %v54_v5, %v53_v3  ;;  %v56_v8 = vld [vmem:[#allocation2 + $0x28] sm:$0xff]  ;;  %v35_v10 = vld [vmem:[%s1679_s0] sm:$0xff]  ;;  %v57_v11 = vld [vmem:[#allocation2 + $0x30] sm:$0xff] }
  0x17   :  { %729 = vmatprep.subr.bf16.mxu0 %v728_v4  ;;  %760 = vmatprep.subr.bf16.mxu1 %v728_v4  ;;  %v736_v9 = vpack.c.bf16 %v56_v8, %v55_v7  ;;  %v58_v12 = vld [vmem:[#allocation2 + $0x38] sm:$0xff]  ;;  %v43_v13 = vld [vmem:[%s1679_s0 + $0x40] sm:$0xff]  ;;  %v60_v16 = vld [vmem:[#allocation2 + $0x48] sm:$0xff] }
  0x18   :  { %731 = vmatpush3.bf16.msra.mxu0 %v728_v4  ;;  %768 = vmatpush3.bf16.msra.mxu1 %v728_v4  ;;  %v740_v14 = vpack.c.bf16 %v58_v12, %v57_v11  ;;  %v59_v15 = vld [vmem:[#allocation2 + $0x40] sm:$0xff]  ;;  %v955_v18 = vld [vmem:[%s1681_s2 + $0x10] sm:$0xff]  ;;  %v251_v19 = vld [vmem:[%s1681_s2 + $0x8] sm:$0xff] }
  0x19   :  { %733 = vmatprep.subr.bf16.mxu0 %v732_v6  ;;  %761 = vmatprep.subr.bf16.mxu1 %v732_v6  ;;  %v949_v17 = vld [vmem:[%s1681_s2] sm:$0xff]  ;;  %v963_v20 = vld [vmem:[%s1681_s2 + $0x18] sm:$0xff]  ;;  %vm268_vm1 = vcmp.ge.s32.totalorder %v955_v18, 0  ;;  %vm267_vm2 = vcmp.ge.s32.totalorder %v251_v19, 0  ;;  %v744_v22 = vpack.c.bf16 %v60_v16, %v59_v15  ;;  %v977_v25 = vld [vmem:[%s1681_s2 + $0x28] sm:$0xff] }
  0x1a   :  { %704 = vmatprep.mubr.f32.mxu0 %v35_v10  ;;  %716 = vmatprep.mubr.f32.mxu1 %v43_v13  ;;  %vm266_vm0 = vcmp.ge.s32.totalorder %v949_v17, 0  ;;  %vm269_vm3 = vcmp.ge.s32.totalorder %v963_v20, 0  ;;  %v284_v23 = vsel %vm268_vm1, 1, %v893_v0  ;;  %v972_v24 = vld [vmem:[%s1681_s2 + $0x20] sm:$0xff]  ;;  %v61_v26 = vld [vmem:[#allocation2 + $0x50] sm:$0xff]  ;;  %v62_v27 = vld [vmem:[#allocation2 + $0x58] sm:$0xff] }
  0x1b   :  { %v282_v21 = vsel %vm266_vm0, 1, %v893_v0  ;;  %305 = vperm.xlu1 %783, %v284_v23   ;;  %v283_v28 = vsel %vm267_vm2, 1, %v893_v0  ;;  %v285_v29 = vsel %vm269_vm3, 1, %v893_v0  ;;  %vm270_vm4 = vcmp.ge.s32.totalorder %v972_v24, 0  ;;  %v986_v31 = vld [vmem:[%s1681_s2 + $0x30] sm:$0xff]  ;;  %v991_v32 = vld [vmem:[%s1681_s2 + $0x38] sm:$0xff] }
  0x1c   :  { %735 = vmatpush3.bf16.msra.mxu0 %v732_v6  ;;  %769 = vmatpush3.bf16.msra.mxu1 %v732_v6  ;;  %vm271_vm5 = vcmp.ge.s32.totalorder %v977_v25, 0  ;;  %v748_v30 = vpack.c.bf16 %v62_v27, %v61_v26  ;;  %v63_v33 = vld [vmem:[#allocation2 + $0x60] sm:$0xff]  ;;  %v64_v34 = vld [vmem:[#allocation2 + $0x68] sm:$0xff]  ;;  %v286_v35 = vsel %vm270_vm4, 1, %v893_v0  ;;  %vm272_vm6 = vcmp.ge.s32.totalorder %v986_v31, 0  ;;  %v65_v38 = vld [vmem:[#allocation2 + $0x70] sm:$0xff] }
  0x1d   :  { %737 = vmatprep.subr.bf16.mxu0 %v736_v9  ;;  %762 = vmatprep.subr.bf16.mxu1 %v736_v9  ;;  %v287_v36 = vsel %vm271_vm5, 1, %v893_v0  ;;  %vm273_vm7 = vcmp.ge.s32.totalorder %v991_v32, 0  ;;  %v752_v37 = vpack.c.bf16 %v64_v34, %v63_v33  ;;  %v66_v39 = vld [vmem:[#allocation2 + $0x78] sm:$0xff]  ;;  %v288_v40 = vsel %vm272_vm6, 1, %v893_v0  ;;  %v1002_v43 = vld [vmem:[%s1681_s2 + $0x40] sm:$0xff]  ;;  %v1008_v44 = vld [vmem:[%s1681_s2 + $0x48] sm:$0xff] }
  0x1e   :  { %299 = vperm.xlu0 %782, %v282_v21   ;;  %v289_v41 = vsel %vm273_vm7, 1, %v893_v0  ;;  %v756_v42 = vpack.c.bf16 %v66_v39, %v65_v38  ;;  %vm274_vm8 = vcmp.ge.s32.totalorder %v1002_v43, 0  ;;  %v36_v46 = vld [vmem:[%s1679_s0 + $0x8] sm:$0xff]  ;;  %vm275_vm9 = vcmp.ge.s32.totalorder %v1008_v44, 0  ;;  %v37_v48 = vld [vmem:[%s1679_s0 + $0x10] sm:$0xff]  ;;  %v38_v52 = vld [vmem:[%s1679_s0 + $0x18] sm:$0xff] }
  0x1f   :  { %308 = vperm.xlu1 %783, %v285_v29   ;;  %v290_v45 = vsel %vm274_vm8, 1, %v893_v0  ;;  %v44_v47 = vld [vmem:[%s1679_s0 + $0x48] sm:$0xff]  ;;  %v45_v49 = vld [vmem:[%s1679_s0 + $0x50] sm:$0xff]  ;;  %v291_v51 = vsel %vm275_vm9, 1, %v893_v0  ;;  %v46_v53 = vld [vmem:[%s1679_s0 + $0x58] sm:$0xff] }
  0x20   :  { %739 = vmatpush3.bf16.msra.mxu0 %v736_v9  ;;  %770 = vmatpush3.bf16.msra.mxu1 %v736_v9  ;;  %v260_v50 = vld [vmem:[%s1681_s2 + $0x50] sm:$0xff]  ;;  %v39_v54 = vld [vmem:[%s1679_s0 + $0x20] sm:$0xff]  ;;  %v261_v56 = vld [vmem:[%s1681_s2 + $0x58] sm:$0xff] }
  0x21   :  { %741 = vmatprep.subr.bf16.mxu0 %v740_v14  ;;  %763 = vmatprep.subr.bf16.mxu1 %v740_v14  ;;  %vm276_vm10 = vcmp.ge.s32.totalorder %v260_v50, 0  ;;  %v47_v55 = vld [vmem:[%s1679_s0 + $0x60] sm:$0xff]  ;;  %v40_v58 = vld [vmem:[%s1679_s0 + $0x28] sm:$0xff]  ;;  %vm277_vm11 = vcmp.ge.s32.totalorder %v261_v56, 0  ;;  %v41_v60 = vld [vmem:[%s1679_s0 + $0x30] sm:$0xff] }
  0x22   :  { %302 = vperm.xlu0 %782, %v283_v28   ;;  %v292_v57 = vsel %vm276_vm10, 1, %v893_v0  ;;  %v48_v59 = vld [vmem:[%s1679_s0 + $0x68] sm:$0xff]  ;;  %v49_v61 = vld [vmem:[%s1679_s0 + $0x70] sm:$0xff]  ;;  %v262_v62 = vld [vmem:[%s1681_s2 + $0x60] sm:$0xff]  ;;  %v293_v63 = vsel %vm277_vm11, 1, %v893_v0 }
  0x23   :  { %314 = vperm.xlu1 %783, %v287_v36   ;;  %v42_v1 = vld [vmem:[%s1679_s0 + $0x38] sm:$0xff]  ;;  %vm278_vm12 = vcmp.ge.s32.totalorder %v262_v62, 0  ;;  %v263_v3 = vld [vmem:[%s1681_s2 + $0x68] sm:$0xff]  ;;  %v264_v5 = vld [vmem:[%s1681_s2 + $0x70] sm:$0xff] }
  0x24   :  { %743 = vmatpush3.bf16.msra.mxu0 %v740_v14  ;;  %771 = vmatpush3.bf16.msra.mxu1 %v740_v14  ;;  %v50_v2 = vld [vmem:[%s1679_s0 + $0x78] sm:$0xff]  ;;  %v294_v4 = vsel %vm278_vm12, 1, %v893_v0  ;;  %vm279_vm13 = vcmp.ge.s32.totalorder %v263_v3, 0  ;;  %vm280_vm14 = vcmp.ge.s32.totalorder %v264_v5, 0 }
  0x25   :  { %745 = vmatprep.subr.bf16.mxu0 %v744_v22  ;;  %764 = vmatprep.subr.bf16.mxu1 %v744_v22  ;;  %v295_v6 = vsel %vm279_vm13, 1, %v893_v0  ;;  %v265_v7 = vld [vmem:[%s1681_s2 + $0x78] sm:$0xff]  ;;  %v296_v8 = vsel %vm280_vm14, 1, %v893_v0 }
  0x26   :  { %311 = vperm.xlu0 %782, %v286_v35   ;;  %vm281_vm15 = vcmp.ge.s32.totalorder %v265_v7, 0 }
  0x27   :  { %320 = vperm.xlu1 %783, %v289_v41   ;;  %v297_v9 = vsel %vm281_vm15, 1, %v893_v0 }
  0x28   :  { %747 = vmatpush3.bf16.msra.mxu0 %v744_v22  ;;  %772 = vmatpush3.bf16.msra.mxu1 %v744_v22 }
  0x29   :  { %749 = vmatprep.subr.bf16.mxu0 %v748_v30  ;;  %765 = vmatprep.subr.bf16.mxu1 %v748_v30 }
  0x2a   :  { %317 = vperm.xlu0 %782, %v288_v40  }
  0x2b   :  { %383 = vperm.xlu1 %783, %v251_v19  }
  0x2c   :  { %751 = vmatpush3.bf16.msra.mxu0 %v748_v30  ;;  %773 = vmatpush3.bf16.msra.mxu1 %v748_v30 }
  0x2d   :  { %753 = vmatprep.subr.bf16.mxu0 %v752_v37  ;;  %766 = vmatprep.subr.bf16.mxu1 %v752_v37 }
  0x2e   :  { %380 = vperm.xlu0 %782, %v949_v17  }
  0x2f   :  { %386 = vperm.xlu1 %783, %v955_v18  }
  0x30   :  { %755 = vmatpush3.bf16.msra.mxu0 %v752_v37  ;;  %774 = vmatpush3.bf16.msra.mxu1 %v752_v37 }
  0x31   :  { %757 = vmatprep.subr.bf16.mxu0 %v756_v42  ;;  %767 = vmatprep.subr.bf16.mxu1 %v756_v42 }
  0x32   :  { %323 = vperm.xlu0 %782, %v290_v45  }
  0x33   :  { %389 = vperm.xlu1 %783, %v963_v20  }
  0x34   :  { %759 = vmatpush3.bf16.msra.mxu0 %v756_v42  ;;  %775 = vmatpush3.bf16.msra.mxu1 %v756_v42 }
  0x36   :  { %326 = vperm.xlu0 %782, %v291_v51  }
  0x37   :  { %705 = vmatmul.mubr.f32.vlgmr.msra.gmra.mrb[0].mxu0 %v36_v46  ;;  %717 = vmatmul.mubr.f32.vlgmr.msra.gmra.mrb[0].mxu1 %v44_v47 }
  0x38   :  { %707 = vmatprep.mubr.f32.mxu0 %v37_v48  ;;  %719 = vmatprep.mubr.f32.mxu1 %v45_v49 }
  0x39   :  { %392 = vperm.xlu1 %783, %v972_v24  }
  0x3a   :  { %329 = vperm.xlu0 %782, %v292_v57  }
  0x3b   :  { %708 = vmatmul.mubr.f32.gmra.mrb[2].mxu0 %v38_v52  ;;  %720 = vmatmul.mubr.f32.gmra.mrb[2].mxu1 %v46_v53 }
  0x3c   :  { %710 = vmatprep.mubr.f32.mxu0 %v39_v54  ;;  %722 = vmatprep.mubr.f32.mxu1 %v47_v55  ;;  %v213_v55 = vlaneseq }
  0x3d   :  { %395 = vperm.xlu1 %783, %v977_v25  }
  0x3e   :  { %332 = vperm.xlu0 %782, %v293_v63  }
  0x3f   :  { %711 = vmatmul.mubr.f32.gmra.mrb[4].mxu0 %v40_v58  ;;  %723 = vmatmul.mubr.f32.gmra.mrb[4].mxu1 %v48_v59 }
  0x40   :  { %713 = vmatprep.mubr.f32.mxu0 %v41_v60  ;;  %725 = vmatprep.mubr.f32.mxu1 %v49_v61  ;;  %v1157_v60 = vshrl.u32 %v213_v55, 7 }
  0x41   :  { %398 = vperm.xlu1 %783, %v986_v31  }
  0x42   :  { %335 = vperm.xlu0 %782, %v294_v4   ;;  %v1166_v4 = vadd.s32 24, %v1157_v60 }
  0x43   :  { %714 = vmatmul.mubr.f32.gmra.mrb[6].mxu0 %v42_v1  ;;  %726 = vmatmul.mubr.f32.gmra.mrb[6].mxu1 %v50_v2  ;;  %v1161_v1 = vand.u32 127, %v213_v55  ;;  %v216_v2 = vadd.s32 16, %v1157_v60  ;;  %v1298_v55 = vadd.s32 80, %v1157_v60 }
  0x45   :  { %401 = vperm.xlu1 %783, %v991_v32   ;;  %vm234_vm0 = vcmp.ne.s32.totalorder %v1157_v60, %v1161_v1  ;;  %vm236_vm1 = vcmp.ne.s32.totalorder %v216_v2, %v1161_v1  ;;  %vm237_vm3 = vcmp.ne.s32.totalorder %v1166_v4, %v1161_v1 }
  0x46   :  { %338 = vperm.xlu0 %782, %v295_v6  }
  0x49   :  { %404 = vperm.xlu1 %783, %v1002_v43  }
  0x4a   :  { %341 = vperm.xlu0 %782, %v296_v8  }
  0x4d   :  { %407 = vperm.xlu1 %783, %v1008_v44  }
  0x4e   :  { %344 = vperm.xlu0 %782, %v297_v9   ;;  %v1180_v9 = vadd.s32 32, %v1157_v60 }
  0x50   :  { %vm238_vm11 = vcmp.ne.s32.totalorder %v1180_v9, %v1161_v1 }
  0x51   :  { %413 = vperm.xlu1 %783, %v261_v56  }
  0x52   :  { %410 = vperm.xlu0 %782, %v260_v50  }
  0x55   :  { %419 = vperm.xlu1 %783, %v263_v3   ;;  %v215_v3 = vadd.s32 8, %v1157_v60 }
  0x56   :  { %416 = vperm.xlu0 %782, %v262_v62  }
  0x57   :  { %vm235_vm2 = vcmp.ne.s32.totalorder %v215_v3, %v1161_v1  ;;  %v1337_v3 = vadd.s32 96, %v1157_v60 }
  0x59   :  { %425 = vperm.xlu1 %783, %v265_v7   ;;  %v1173_v7 = vld [vmem:[%s1682_s3] ss:$0 sm:$0xff]  ;;  %s894_s3 = smov [#allocation5]  }
  0x5a   :  { %422 = vperm.xlu0 %782, %v264_v5   ;;  %s616_s18 = sshll.u32 %s894_s3, 4  ;;  %s617_s18 = int_to_ptr.vmem [resolvable:$true] %s616_s18 }
  0x5b   :  { %s840_s19 = scalar_lea.vmem %s617_s18, 16  ;;  %s844_s20 = scalar_lea.vmem %s617_s18, 32 }
  0x5c   :  { %p841_p8 = scmp.ne.s32.totalorder %s617_s18, %s840_s19  ;;  %p845_p9 = scmp.lt.s32.totalorder %s617_s18, %s617_s18 }
  0x5d   :  { %p846_p10 = scmp.lt.s32.totalorder %s844_s20, %s840_s19 }
  0x5f   :  { %p847_p11 = por %p846_p10, %p845_p9 }
  0x61   :  { %p848_p12 = pnand %p847_p11, %p841_p8 }
  0x9a   :  { %v1090_v11 = vpop.permute.xlu1 %305 }
  0x9b   :  { %vm348_vm10 = vcmp.eq.s32.totalorder %v1090_v11, 1  ;;  %v1321_v11 = vadd.s32 88, %v1157_v60 }
  0x9d   :  { %v1088_v10 = vpop.permute.xlu0 %299 }
  0x9e   :  { %v1094_v13 = vpop.permute.xlu1 %308  ;;  %vm346_vm4 = vcmp.eq.s32.totalorder %v1088_v10, 1 }
  0x9f   :  { %vm1230_vm7 = vmand %vm234_vm0, %vm346_vm4  ;;  %vm349_vm15 = vcmp.eq.s32.totalorder %v1094_v13, 1 }
  0xa0   :  { %vm1307_vm4 = vmand %vm236_vm1, %vm348_vm10 }
  0xa1   :  { %v1092_v12 = vpop.permute.xlu0 %302  ;;  %vm1329_vm1 = vmand %vm237_vm3, %vm349_vm15 }
  0xa2   :  { %v1098_v0 = vpop.permute.xlu1 %314  ;;  %vm347_vm5 = vcmp.eq.s32.totalorder %v1092_v12, 1  ;;  %v1264_v12 = vadd.s32 64, %v1157_v60 }
  0xa3   :  { %vm1251_vm9 = vmand %vm235_vm2, %vm347_vm5  ;;  %vm351_vm10 = vcmp.eq.s32.totalorder %v1098_v0, 1 }
  0xa5   :  { %v1096_v14 = vpop.permute.xlu0 %311 }
  0xa6   :  { %v1102_v16 = vpop.permute.xlu1 %320 }
  0xa9   :  { %v1100_v15 = vpop.permute.xlu0 %317 }
  0xaa   :  { %v1106_v18 = vpop.permute.xlu1 %383 }
  0xab   :  { %vm432_vm8 = vcmp.eq.s32.totalorder %v1106_v18, %v1173_v7 }
  0xac   :  { %vm1293_vm2 = vmand %vm432_vm8, %vm1251_vm9 }
  0xad   :  { %v1104_v17 = vpop.permute.xlu0 %380 }
  0xae   :  { %v1118_v24 = vpop.permute.xlu1 %386  ;;  %vm431_vm6 = vcmp.eq.s32.totalorder %v1104_v17, %v1173_v7  ;;  %v1435_v17 = vadd.s32 120, %v1157_v60 }
  0xaf   :  { %vm1278_vm14 = vmand %vm431_vm6, %vm1230_vm7  ;;  %vm433_vm5 = vcmp.eq.s32.totalorder %v1118_v24, %v1173_v7  ;;  %vm350_vm6 = vcmp.eq.s32.totalorder %v1096_v14, 1 }
  0xb0   :  { %vm1362_vm15 = vmand %vm238_vm11, %vm350_vm6  ;;  %vm352_vm11 = vcmp.eq.s32.totalorder %v1100_v15, 1 }
  0xb1   :  { %v1116_v23 = vpop.permute.xlu0 %323 }
  0xb2   :  { %v1137_v36 = vpop.permute.xlu1 %389 }
  0xb5   :  { %v1134_v34 = vpop.permute.xlu0 %326 }
  0xb8   :  { %v1151_v52 = vpop.permute.xlu1 %392 }
  0xb9   :  { %v1147_v48 = vpop.permute.xlu0 %329 }
  0xbc   :  { %v1155_v58 = vpop.permute.xlu1 %395 }
  0xbd   :  { %v1153_v56 = vpop.permute.xlu0 %332  ;;  %vm436_vm3 = vcmp.eq.s32.totalorder %v1155_v58, %v1173_v7 }
  0xc0   :  { %v1168_v5 = vpop.permute.xlu1 %398 }
  0xc1   :  { %v1159_v62 = vpop.permute.xlu0 %335 }
 0x10a   :  { %v1108_v19 = vpop.f32.mrb[0].mxu0  ;;  %v1110_v20 = vpop.f32.mrb[0].mxu1 }
 0x10b   :  { %v1112_v21 = vpop.f32.mrb[1].mxu0  ;;  %v1114_v22 = vpop.f32.mrb[1].mxu1 }
 0x10e   :  { %v1120_v25 = vpop.f32.mrb[2].mxu0  ;;  %v1122_v26 = vpop.f32.mrb[2].mxu1 }
 0x10f   :  { %v143_v27 = vpop.f32.mrb[3].mxu0  ;;  %v1124_v28 = vpop.f32.mrb[3].mxu1 }
 0x112   :  { %v1126_v29 = vpop.f32.mrb[4].mxu0  ;;  %v1128_v30 = vpop.f32.mrb[4].mxu1 }
 0x113   :  { %v464_v31 = vmax.f32 %v1108_v19, %v1126_v29  ;;  %v153_v32 = vpop.f32.mrb[5].mxu0  ;;  %v1132_v33 = vpop.f32.mrb[5].mxu1 }
 0x114   :  { %v463_v35 = vmax.f32 %v1112_v21, %v153_v32 }
 0x115   :  { %v468_v37 = vmax.f32 %v464_v31, %v1110_v20  ;;  %v1185_v31 = vadd.s32 40, %v1157_v60 }
 0x116   :  { %v715_v38 = vpop.f32.mrb[6].mxu0  ;;  %v467_v39 = vmax.f32 %v463_v35, %v1114_v22  ;;  %v1141_v40 = vpop.f32.mrb[6].mxu1  ;;  %v1188_v35 = vadd.s32 48, %v1157_v60 }
 0x117   :  { %v472_v41 = vmax.f32 %v468_v37, %v1128_v30  ;;  %v466_v42 = vmax.f32 %v1120_v25, %v715_v38  ;;  %v163_v43 = vpop.f32.mrb[7].mxu0  ;;  %v203_v44 = vpop.f32.mrb[7].mxu1  ;;  %vm239_vm12 = vcmp.ne.s32.totalorder %v1185_v31, %v1161_v1 }
 0x118   :  { %v471_v45 = vmax.f32 %v467_v39, %v1132_v33  ;;  %v465_v46 = vmax.f32 %v143_v27, %v163_v43  ;;  %v1190_v37 = vpop.permute.xlu0 %338  ;;  %vm240_vm13 = vcmp.ne.s32.totalorder %v1188_v35, %v1161_v1 }
 0x119   :  { %v470_v47 = vmax.f32 %v466_v42, %v1122_v26  ;;  %v1201_v42 = vpop.permute.xlu1 %401 }
 0x11a   :  { %v475_v49 = vmax.f32 %v471_v45, %v472_v41  ;;  %v469_v50 = vmax.f32 %v465_v46, %v1124_v28  ;;  %v1197_v41 = vadd.s32 56, %v1157_v60 }
 0x11b   :  { %v474_v51 = vmax.f32 %v470_v47, %v1141_v40 }
 0x11c   :  { %v473_v53 = vmax.f32 %v469_v50, %v203_v44  ;;  %vm241_vm0 = vcmp.ne.s32.totalorder %v1197_v41, %v1161_v1 }
 0x11e   :  { %v476_v54 = vmax.f32 %v473_v53, %v474_v51 }
 0x120   :  { %v477_v57 = vmax.f32 %v475_v49, %v476_v54  ;;  %v1283_v54 = vadd.s32 72, %v1157_v60 }
 0x122   :  { %v478_v59 = vrot.slane %v477_v57, 4 }
 0x124   :  { %v479_v61 = vmax.f32 %v477_v57, %v478_v59  ;;  %v1300_v57 = vpop.permute.xlu1 %404 }
 0x126   :  { %v480_v63 = vrot.slane %v479_v61, 2 }
 0x128   :  { %v481_v6 = vmax.f32 %v479_v61, %v480_v63  ;;  %v1387_v9 = vpop.permute.xlu1 %407 }
 0x12a   :  { %v482_v8 = vrot.slane %v481_v6, 1 }
 0x12c   :  { %v1192_v39 = vmax.f32 %v481_v6, %v482_v8  ;;  %v1340_v6 = vadd.s32 104, %v1157_v60 }
 0x12e   :  { %v1204_v45 = vsub.f32 %v203_v44, %v1192_v39  ;;  %v484_v46 = vsub.f32 %v1112_v21, %v1192_v39  ;;  %v485_v47 = vsub.f32 %v1108_v19, %v1192_v39  ;;  %v1211_v10 = vsub.f32 %v143_v27, %v1192_v39 }
 0x12f   :  { %v1215_v49 = vsub.f32 %v1120_v25, %v1192_v39  ;;  %v1218_v50 = vsub.f32 %v153_v32, %v1192_v39  ;;  %v1222_v44 = vsub.f32 %v1126_v29, %v1192_v39  ;;  %v1225_v51 = vsub.f32 %v163_v43, %v1192_v39 }
 0x130   :  { %v1237_v21 = vsub.f32 %v715_v38, %v1192_v39  ;;  %v1241_v25 = vsub.f32 %v1114_v22, %v1192_v39  ;;  %v1245_v27 = vsub.f32 %v1110_v20, %v1192_v39  ;;  %v1257_v32 = vsub.f32 %v1124_v28, %v1192_v39  ;;  %v1266_v20 = vpop.permute.xlu0 %341 }
 0x131   :  { %v500_v38 = vmul.f32 1.442695, %v484_v46  ;;  %v502_v43 = vmul.f32 1.442695, %v485_v47  ;;  %v504_v22 = vmul.f32 1.442695, %v1211_v10  ;;  %v1377_v14 = vsub.f32 %v1128_v30, %v1192_v39 }
 0x132   :  { %v506_v53 = vmul.f32 1.442695, %v1215_v49  ;;  %v508_v59 = vmul.f32 1.442695, %v1218_v50  ;;  %v572_v18 = vsel %vm1278_vm14, %v484_v46, 0.0  ;;  %v573_v63 = vsel %vm1293_vm2, %v485_v47, 0.0  ;;  %vm1344_vm2 = vmand %vm433_vm5, %vm1307_vm4 }
 0x133   :  { %784 = vpow2.f32 %v500_v38  ;;  %v510_v2 = vmul.f32 1.442695, %v1222_v44  ;;  %vm434_vm14 = vcmp.eq.s32.totalorder %v1137_v36, %v1173_v7  ;;  %v512_v8 = vmul.f32 1.442695, %v1225_v51 }
 0x134   :  { %786 = vpow2.f32 %v502_v43  ;;  %v1350_v4 = vpop.permute.xlu0 %344  ;;  %v588_v46 = vadd.f32 %v573_v63, %v572_v18  ;;  %v1355_v47 = vsub.f32 %v1122_v26, %v1192_v39  ;;  %vm435_vm5 = vcmp.eq.s32.totalorder %v1151_v52, %v1173_v7  ;;  %vm450_vm6 = vmand %vm434_vm14, %vm1329_vm1 }
 0x135   :  { %788 = vpow2.f32 %v504_v22  ;;  %v574_v43 = vsel %vm1344_vm2, %v1211_v10, 0.0  ;;  %v1373_v26 = vsub.f32 %v1132_v33, %v1192_v39  ;;  %v514_v33 = vmul.f32 1.442695, %v1237_v21  ;;  %vm1395_vm2 = vmand %vm239_vm12, %vm351_vm10 }
 0x136   :  { %790 = vpow2.f32 %v506_v53  ;;  %v589_v10 = vadd.f32 %v588_v46, %v574_v43  ;;  %vm353_vm14 = vcmp.eq.s32.totalorder %v1102_v16, 1  ;;  %v1403_v36 = vadd.s32 112, %v1157_v60  ;;  %vm1411_vm8 = vmand %vm435_vm5, %vm1362_vm15 }
 0x137   :  { %792 = vpow2.f32 %v508_v59  ;;  %v575_v22 = vsel %vm450_vm6, %v1215_v49, 0.0  ;;  %vm245_vm12 = vcmp.ne.s32.totalorder %v1321_v11, %v1161_v1  ;;  %v516_v31 = vmul.f32 1.442695, %v1241_v25  ;;  %vm1427_vm10 = vmand %vm240_vm13, %vm352_vm11 }
 0x138   :  { %794 = vpow2.f32 %v510_v2  ;;  %v590_v53 = vadd.f32 %v589_v10, %v575_v22  ;;  %v1420_v28 = vsub.f32 %v1141_v40, %v1192_v39  ;;  %vm354_vm5 = vcmp.eq.s32.totalorder %v1116_v23, 1  ;;  %vm1445_vm13 = vmand %vm436_vm3, %vm1395_vm2  ;;  %v411_v39 = vpop.permute.xlu0 %410 }
 0x139   :  { %796 = vpow2.f32 %v512_v8  ;;  %vm437_vm6 = vcmp.eq.s32.totalorder %v1168_v5, %v1173_v7  ;;  %v576_v40 = vsel %vm1411_vm8, %v1218_v50, 0.0  ;;  %v518_v60 = vmul.f32 1.442695, %v1245_v27  ;;  %vm1459_vm8 = vmand %vm241_vm0, %vm353_vm14  ;;  %v414_v8 = vpop.permute.xlu1 %413 }
 0x13a   :  { %798 = vpow2.f32 %v514_v33  ;;  %v591_v59 = vadd.f32 %v590_v53, %v576_v40  ;;  %vm355_vm3 = vcmp.eq.s32.totalorder %v1134_v34, 1  ;;  %vm438_vm11 = vcmp.eq.s32.totalorder %v1201_v42, %v1173_v7 }
 0x13b   :  { %v577_v63 = vsel %vm1445_vm13, %v1222_v44, 0.0  ;;  %800 = vpow2.f32 %v516_v31  ;;  %v520_v29 = vmul.f32 1.442695, %v1257_v32  ;;  %vm439_vm13 = vcmp.eq.s32.totalorder %v1300_v57, %v1173_v7 }
 0x13c   :  { %v592_v13 = vadd.f32 %v591_v59, %v577_v63  ;;  %802 = vpow2.f32 %v518_v60  ;;  %v522_v61 = vmul.f32 1.442695, %v1355_v47  ;;  %vm357_vm0 = vcmp.eq.s32.totalorder %v1153_v56, 1  ;;  %v417_v22 = vpop.permute.xlu0 %416 }
 0x13d   :  { %v785_v49 = vpop.eup %784  ;;  %804 = vpow2.f32 %v520_v29  ;;  %v524_v0 = vmul.f32 1.442695, %v1373_v26  ;;  %v420_v53 = vpop.permute.xlu1 %419 }
 0x13e   :  { %v787_v15 = vpop.eup %786  ;;  %v532_v50 = vsel %vm1230_vm7, %v785_v49, 0.0  ;;  %vm1476_vm7 = vmand %vm437_vm6, %vm1427_vm10  ;;  %vm356_vm6 = vcmp.eq.s32.totalorder %v1147_v48, 1  ;;  %806 = vpow2.f32 %v522_v61  ;;  %v526_v49 = vmul.f32 1.442695, %v1377_v14 }
 0x13f   :  { %v789_v18 = vpop.eup %788  ;;  %v533_v19 = vsel %vm1251_vm9, %v787_v15, 0.0  ;;  %vm1713_vm9 = vcmp.ne.s32.totalorder %v1264_v12, %v1161_v1  ;;  %v578_v46 = vsel %vm1476_vm7, %v1225_v51, 0.0  ;;  %v528_v15 = vmul.f32 1.442695, %v1204_v45 }
 0x140   :  { %v791_v16 = vpop.eup %790  ;;  %v548_v2 = vadd.f32 %v533_v19, %v532_v50  ;;  %vm1488_vm14 = vmand %vm1713_vm9, %vm354_vm5  ;;  %v534_v44 = vsel %vm1307_vm4, %v789_v18, 0.0  ;;  %v593_v43 = vadd.f32 %v592_v13, %v578_v46  ;;  %vm1716_vm4 = vcmp.ne.s32.totalorder %v1283_v54, %v1161_v1 }
 0x141   :  { %v793_v23 = vpop.eup %792  ;;  %vm454_vm5 = vmand %vm438_vm11, %vm1459_vm8  ;;  %vm440_vm11 = vcmp.eq.s32.totalorder %v1387_v9, %v1173_v7  ;;  %v535_v42 = vsel %vm1329_vm1, %v791_v16, 0.0  ;;  %vm1719_vm1 = vcmp.ne.s32.totalorder %v1298_v55, %v1161_v1  ;;  %vm441_vm9 = vcmp.eq.s32.totalorder %v411_v39, %v1173_v7  ;;  %v426_v19 = vpop.permute.xlu1 %425 }
 0x142   :  { %v549_v12 = vadd.f32 %v548_v2, %v534_v44  ;;  %vm1513_vm7 = vmand %vm1716_vm4, %vm355_vm3  ;;  %v579_v33 = vsel %vm454_vm5, %v1237_v21, 0.0  ;;  %v795_v10 = vpop.eup %794  ;;  %vm358_vm5 = vcmp.eq.s32.totalorder %v1159_v62, 1  ;;  %v536_v57 = vsel %vm1362_vm15, %v793_v23, 0.0  ;;  %v423_v62 = vpop.permute.xlu0 %422 }
 0x143   :  { %vm455_vm3 = vmand %vm439_vm13, %vm1488_vm14  ;;  %v594_v54 = vadd.f32 %v593_v43, %v579_v33  ;;  %v797_v31 = vpop.eup %796  ;;  %v537_v38 = vsel %vm1395_vm2, %v795_v10, 0.0  ;;  %808 = vpow2.f32 %v524_v0  ;;  %vm1724_vm2 = vcmp.ne.s32.totalorder %v1337_v3, %v1161_v1 }
 0x144   :  { %v550_v34 = vadd.f32 %v549_v12, %v535_v42  ;;  %vm1534_vm4 = vmand %vm1719_vm1, %vm356_vm6  ;;  %v580_v24 = vsel %vm455_vm3, %v1241_v25, 0.0  ;;  %vm359_vm6 = vcmp.eq.s32.totalorder %v1190_v37, 1  ;;  %v799_v40 = vpop.eup %798  ;;  %vm360_vm3 = vcmp.eq.s32.totalorder %v1266_v20, 1 }
 0x145   :  { %vm456_vm13 = vmand %vm440_vm11, %vm1513_vm7  ;;  %v595_v55 = vadd.f32 %v594_v54, %v580_v24  ;;  %vm442_vm11 = vcmp.eq.s32.totalorder %v414_v8, %v1173_v7  ;;  %v538_v30 = vsel %vm1427_vm10, %v797_v31, 0.0  ;;  %v801_v39 = vpop.eup %800  ;;  %810 = vpow2.f32 %v526_v49 }
 0x146   :  { %v551_v48 = vadd.f32 %v550_v34, %v536_v57  ;;  %vm1554_vm15 = vmand %vm245_vm12, %vm357_vm0  ;;  %v581_v9 = vsel %vm456_vm13, %v1245_v27, 0.0  ;;  %v530_v3 = vmul.f32 1.442695, %v1420_v28  ;;  %vm1727_vm10 = vcmp.ne.s32.totalorder %v1340_v6, %v1161_v1  ;;  %v803_v18 = vpop.eup %802 }
 0x147   :  { %vm457_vm12 = vmand %vm441_vm9, %vm1534_vm4  ;;  %v596_v11 = vadd.f32 %v595_v55, %v581_v9  ;;  %vm443_vm9 = vcmp.eq.s32.totalorder %v417_v22, %v1173_v7  ;;  %vm249_vm13 = vcmp.ne.s32.totalorder %v1435_v17, %v1161_v1  ;;  %v539_v52 = vsel %vm1459_vm8, %v799_v40, 0.0  ;;  %v805_v16 = vpop.eup %804 }
 0x148   :  { %v552_v56 = vadd.f32 %v551_v48, %v537_v38  ;;  %vm1573_vm0 = vmand %vm1724_vm2, %vm358_vm5  ;;  %v582_v35 = vsel %vm457_vm12, %v1257_v32, 0.0  ;;  %vm361_vm12 = vcmp.eq.s32.totalorder %v1350_v4, 1  ;;  %812 = vpow2.f32 %v528_v15  ;;  %v807_v2 = vpop.eup %806 }
 0x149   :  { %v597_v50 = vadd.f32 %v596_v11, %v582_v35  ;;  %vm458_vm1 = vmand %vm442_vm11, %vm1554_vm15  ;;  %vm444_vm11 = vcmp.eq.s32.totalorder %v420_v53, %v1173_v7  ;;  %vm1730_vm8 = vcmp.ne.s32.totalorder %v1403_v36, %v1161_v1  ;;  %v540_v58 = vsel %vm1488_vm14, %v801_v39, 0.0 }
 0x14a   :  { %v553_v60 = vadd.f32 %v552_v56, %v538_v30  ;;  %vm1592_vm5 = vmand %vm1727_vm10, %vm359_vm6  ;;  %v583_v59 = vsel %vm458_vm1, %v1355_v47, 0.0  ;;  %vm445_vm1 = vcmp.eq.s32.totalorder %v423_v62, %v1173_v7  ;;  %814 = vpow2.f32 %v530_v3 }
 0x14b   :  { %v598_v6 = vadd.f32 %v597_v50, %v583_v59  ;;  %vm459_vm6 = vmand %vm443_vm9, %vm1573_vm0  ;;  %vm446_vm14 = vcmp.eq.s32.totalorder %v426_v19, %v1173_v7  ;;  %v542_v1 = vsel %vm1534_vm4, %v805_v16, 0.0  ;;  %v543_v7 = vsel %vm1554_vm15, %v807_v2, 0.0 }
 0x14c   :  { %v554_v37 = vadd.f32 %v553_v60, %v539_v52  ;;  %vm1612_vm2 = vmand %vm1730_vm8, %vm360_vm3  ;;  %v584_v63 = vsel %vm459_vm6, %v1373_v26, 0.0  ;;  %v541_v26 = vsel %vm1513_vm7, %v803_v18, 0.0 }
 0x14d   :  { %v599_v29 = vadd.f32 %v598_v6, %v584_v63  ;;  %vm460_vm9 = vmand %vm444_vm11, %vm1592_vm5  ;;  %v809_v17 = vpop.eup %808 }
 0x14e   :  { %v555_v41 = vadd.f32 %v554_v37, %v540_v58  ;;  %vm1629_vm3 = vmand %vm249_vm13, %vm361_vm12  ;;  %v585_v36 = vsel %vm460_vm9, %v1377_v14, 0.0  ;;  %v544_v43 = vsel %vm1573_vm0, %v809_v17, 0.0 }
 0x14f   :  { %v600_v8 = vadd.f32 %v599_v29, %v585_v36  ;;  %vm461_vm10 = vmand %vm445_vm1, %vm1612_vm2  ;;  %v811_v46 = vpop.eup %810 }
 0x150   :  { %v556_v13 = vadd.f32 %v555_v41, %v541_v26  ;;  %v586_v4 = vsel %vm461_vm10, %v1204_v45, 0.0  ;;  %vm462_vm7 = vmand %vm446_vm14, %vm1629_vm3  ;;  %v545_v42 = vsel %vm1592_vm5, %v811_v46, 0.0 }
 0x151   :  { %v601_v44 = vadd.f32 %v600_v8, %v586_v4  ;;  %v587_v14 = vsel %vm462_vm7, %v1420_v28, 0.0 }
 0x152   :  { %v557_v5 = vadd.f32 %v556_v13, %v542_v1  ;;  %v813_v61 = vpop.eup %812 }
 0x153   :  { %v602_v12 = vadd.f32 %v601_v44, %v587_v14  ;;  %v546_v54 = vsel %vm1612_vm2, %v813_v61, 0.0 }
 0x154   :  { %v558_v23 = vadd.f32 %v557_v5, %v543_v7  ;;  %v815_v33 = vpop.eup %814 }
 0x155   :  { %v603_v51 = vrot.slane %v602_v12, 4  ;;  %v547_v0 = vsel %vm1629_vm3, %v815_v33, 0.0 }
 0x156   :  { %v559_v45 = vadd.f32 %v558_v23, %v544_v43 }
 0x157   :  { %v604_v10 = vadd.f32 %v603_v51, %v602_v12 }
 0x158   :  { %v560_v34 = vadd.f32 %v559_v45, %v545_v42 }
 0x159   :  { %v605_v22 = vrot.slane %v604_v10, 2 }
 0x15a   :  { %v561_v28 = vadd.f32 %v560_v34, %v546_v54 }
 0x15b   :  { %v606_v21 = vadd.f32 %v605_v22, %v604_v10 }
 0x15c   :  { %v562_v57 = vadd.f32 %v561_v28, %v547_v0 }
 0x15d   :  { %v607_v24 = vrot.slane %v606_v21, 1 }
 0x15e   :  { %v563_v31 = vrot.slane %v562_v57, 4 }
 0x15f   :  { %v608_v48 = vadd.f32 %v607_v24, %v606_v21 }
 0x160   :  { %v564_v55 = vadd.f32 %v563_v31, %v562_v57 }
 0x161   :  { %609 = vst [vmem:[#allocation5] sm:$0x1] %v608_v48 }
 0x162   :  { %v565_v53 = vrot.slane %v564_v55, 2 }
 0x163   :  { %851 = shalt.err (!%p848_p12)
}
 0x164   :  { %s852_s23 = scalar_lea.hbm %s1683_s4, 16 }
 0x165   :  { %p853_p13 = scmp.ne.s32.totalorder %s1683_s4, %s852_s23  ;;  %p856_p0 = scmp.lt.u32.totalorder %s852_s23, %s1683_s4 }
 0x167   :  { %p858_p1 = pnand %p856_p0, %p853_p13 }
 0x169   :  { %861 = shalt.err (!%p858_p1)
}
 0x16a   :  { %619 = dma.vmem_to_hbm [thread:$0]  %s617_s18, 16, %s1683_s4, [#allocation4]   ;;  %v566_v49 = vadd.f32 %v565_v53, %v564_v55 }
 0x16b   :  { %s895_s30 = smov [#allocation6]  }
 0x16c   :  { %v567_v25 = vrot.slane %v566_v49, 1  ;;  %s626_s6 = sshll.u32 %s895_s30, 4  ;;  %s627_s6 = int_to_ptr.vmem [resolvable:$true] %s626_s6 }
 0x16d   :  { %s862_s1 = scalar_lea.vmem %s627_s6, 16  ;;  %s866_s7 = scalar_lea.vmem %s627_s6, 32 }
 0x16e   :  { %v568_v38 = vadd.f32 %v567_v25, %v566_v49  ;;  %p863_p2 = scmp.ne.s32.totalorder %s627_s6, %s862_s1  ;;  %p867_p3 = scmp.lt.s32.totalorder %s627_s6, %s627_s6 }
 0x16f   :  { %p868_p4 = scmp.lt.s32.totalorder %s866_s7, %s862_s1 }
 0x170   :  { %816 = vlog2.f32 %v568_v38 }
 0x171   :  { %p869_p5 = por %p868_p4, %p867_p3 }
 0x173   :  { %p870_p6 = pnand %p869_p5, %p863_p2 }
 0x17a   :  { %v817_v9 = vpop.eup %816 }
 0x17b   :  { %v570_v40 = vmul.f32 0.6931472, %v817_v9 }
 0x17d   :  { %571 = vst [vmem:[#allocation6] sm:$0x1] %v570_v40 }
 0x17e   :  { %873 = shalt.err (!%p870_p6)
}
 0x17f   :  { %s874_s9 = scalar_lea.hbm %s1684_s5, 16 }
 0x180   :  { %p875_p7 = scmp.ne.s32.totalorder %s1684_s5, %s874_s9  ;;  %p878_p8 = scmp.lt.u32.totalorder %s874_s9, %s1684_s5 }
 0x182   :  { %p880_p9 = pnand %p878_p8, %p875_p7 }
 0x184   :  { %883 = shalt.err (!%p880_p9)
}
 0x185   :  { %629 = dma.vmem_to_hbm [thread:$0]  %s627_s6, 16, %s1684_s5, [#allocation7]  }
 0x186   :  { %886 = dma.done.wait [#allocation4], 16  }
 0x187   :  { %887 = vsyncadd [#allocation4], 4294967280 }
 0x188   :  { %888 = dma.done.wait [#allocation7], 16  }
 0x189   :  { %889 = vsyncadd [#allocation7], 4294967280 }
 0x18a   :  { %636 = vsyncpa [#allocation3], 1 }
 0x18b   :  { %637 = vsyncpa [#allocation4], 1 }
 0x18c   :  { %638 = vsyncpa [#allocation7], 1 }

</bundles_post_ra>
